<compile_context>
chip_gen: v5e
topology: v5e:2x2
jax: 0.10.0
libtpu: 0.0.40
codegen_flags: <defaults>
</compile_context>

<pallas_src>
import math

import jax
import jax.numpy as jnp
import numpy as np
from jax.experimental import pallas as pl
from jax.experimental.pallas import tpu as pltpu


def _layernorm(x, gamma, beta, eps=1e-5):
    mu = jnp.mean(x, axis=-1, keepdims=True)
    var = jnp.mean((x - mu) ** 2, axis=-1, keepdims=True)
    return (x - mu) * jax.lax.rsqrt(var + eps) * gamma + beta


def _stack_kernel(x_hbm,                       # (B,S,D) f32, raw HBM ref
                  ln1g_ref, ln1b_ref,          # (1,D) f32
                  wqkv_ref, wo_ref,            # (D,3D) / (D,D) bf16
                  ln2g_ref, ln2b_ref,          # (1,D) f32
                  w1_ref, b1_ref,              # (D,H) bf16 / (1,H) f32
                  w2_ref, b2_ref,              # (H,D) bf16 / (1,D) f32
                  o_ref,                       # (B,S,D) f32, resident carry
                  dma_sem):
    bf16 = jnp.bfloat16
    f32 = jnp.float32

    # Pull x into the resident output block exactly once (no pipelined x input).
    @pl.when(pl.program_id(0) == 0)
    def _():
        cp = pltpu.make_async_copy(x_hbm, o_ref, dma_sem)
        cp.start()
        cp.wait()

    B, S, D = o_ref.shape
    M = B * S

    cur = o_ref[...]                 # (B, S, D) f32 — carried x_k
    cur2 = cur.reshape(M, D)         # fold batch into the matmul M dimension

    # ---- f(x): pre-norm single-head attention, fused QKV -------------------
    xn = _layernorm(cur2, ln1g_ref[...], ln1b_ref[...])            # (M, D) f32
    qkv = jnp.dot(xn.astype(bf16), wqkv_ref[...],
                  preferred_element_type=f32)                       # (M, 3D)
    q = qkv[:, :D].reshape(B, S, D).astype(bf16)   # 1/sqrt(D) folded into Wq
    k = qkv[:, D:2 * D].reshape(B, S, D).astype(bf16)
    v = qkv[:, 2 * D:].reshape(B, S, D).astype(bf16)

    scores = jnp.einsum('bqe,bke->bqk', q, k, preferred_element_type=f32)
    m = jnp.max(scores, axis=-1, keepdims=True)
    e = jnp.exp(scores - m)
    l = jnp.sum(e, axis=-1, keepdims=True)
    probs = e * pl.reciprocal(l, approx=True)                       # EUP divide
    att = jnp.einsum('bqk,bke->bqe', probs.astype(bf16), v,
                     preferred_element_type=f32)                    # (B, S, D)
    f_out = jnp.dot(att.reshape(M, D).astype(bf16), wo_ref[...],
                    preferred_element_type=f32)                     # (M, D)

    # ---- g(x): pre-norm feed-forward ----------------------------------------
    xn2 = _layernorm(cur2, ln2g_ref[...], ln2b_ref[...])            # (M, D)
    h = jnp.dot(xn2.astype(bf16), w1_ref[...],
                preferred_element_type=f32) + b1_ref[...]           # (M, H)
    h = jax.nn.gelu(h)
    g_out = jnp.dot(h.astype(bf16), w2_ref[...],
                    preferred_element_type=f32) + b2_ref[...]       # (M, D)

    # ---- x_{k+1} = x_k + f(x_k) + g(x_k) -------------------------------------
    o_ref[...] = cur + (f_out + g_out).reshape(B, S, D)


def sequential_forward(x, params):
    """x: (B, S, D) f32; params: dict of per-block stacked weights (leading dim L)."""
    B, S, D = x.shape
    L, _, H = params['w1'].shape
    bf16 = jnp.bfloat16

    # Fuse QKV, fold 1/sqrt(D) into Wq, cast all MXU weights to bf16.
    wq_scaled = params['wq'] * (1.0 / math.sqrt(D))
    wqkv = jnp.concatenate([wq_scaled, params['wk'], params['wv']],
                           axis=-1).astype(bf16)                   # (L, D, 3D)
    wo = params['wo'].astype(bf16)                                 # (L, D, D)
    w1 = params['w1'].astype(bf16)                                 # (L, D, H)
    w2 = params['w2'].astype(bf16)                                 # (L, H, D)

    # (L, N) vectors -> (L, 1, N) so the in-kernel refs are clean (1, N) rows.
    ln1g = params['ln1_g'].reshape(L, 1, D)
    ln1b = params['ln1_b'].reshape(L, 1, D)
    ln2g = params['ln2_g'].reshape(L, 1, D)
    ln2b = params['ln2_b'].reshape(L, 1, D)
    b1 = params['b1'].reshape(L, 1, H)
    b2 = params['b2'].reshape(L, 1, D)

    sq = pl.Squeezed()
    vec = lambda n: pl.BlockSpec((sq, 1, n), lambda k: (k, 0, 0))
    mat = lambda m, n: pl.BlockSpec((sq, m, n), lambda k: (k, 0, 0))

    grid_spec = pltpu.PrefetchScalarGridSpec(
        num_scalar_prefetch=0,
        grid=(L,),
        in_specs=[
            pl.BlockSpec(memory_space=pl.ANY),    # x: raw HBM, copied at k==0
            vec(D), vec(D),                       # ln1 gamma / beta
            mat(D, 3 * D),                        # fused Wqkv (Wq pre-scaled)
            mat(D, D),                            # Wo
            vec(D), vec(D),                       # ln2 gamma / beta
            mat(D, H), vec(H),                    # W1, b1
            mat(H, D), vec(D),                    # W2, b2
        ],
        out_specs=pl.BlockSpec((B, S, D), lambda k: (0, 0, 0)),   # resident carry
        scratch_shapes=[pltpu.SemaphoreType.DMA(())],
    )

    M = B * S
    flops = int(L * (2 * M * D * 3 * D      # fused QKV
                     + 4 * B * S * S * D    # scores + PV
                     + 2 * M * D * D        # output projection
                     + 4 * M * D * H))      # FFN up + down
    transcendentals = int(L * (B * S * S + M * H + 2 * M))
    bytes_accessed = int(4 * x.size + 4 * x.size
                         + 2 * (wqkv.size + wo.size + w1.size + w2.size)
                         + 4 * (ln1g.size + ln1b.size + ln2g.size + ln2b.size
                                + b1.size + b2.size))

    return pl.pallas_call(
        _stack_kernel,
        out_shape=jax.ShapeDtypeStruct((B, S, D), jnp.float32),
        grid_spec=grid_spec,
        compiler_params=pltpu.CompilerParams(
            dimension_semantics=("arbitrary",),       # blocks are sequential
            vmem_limit_bytes=64 * 1024 * 1024),
        cost_estimate=pl.CostEstimate(flops=flops,
                                      transcendentals=transcendentals,
                                      bytes_accessed=bytes_accessed),
    )(x, ln1g, ln1b, wqkv, wo, ln2g, ln2b, w1, b1, w2, b2)


# ---------------------- pure-JAX reference ----------------------------------
def _reference(x, p):
    """f32 math, but with the same bf16-quantized matmul weights the kernel uses."""
    L = p['ln1_g'].shape[0]
    D = x.shape[-1]
    bf = lambda w: w.astype(jnp.bfloat16).astype(jnp.float32)
    for k in range(L):
        wq = bf(p['wq'][k] * (1.0 / math.sqrt(D)))
        wk, wv, wo = bf(p['wk'][k]), bf(p['wv'][k]), bf(p['wo'][k])
        w1, w2 = bf(p['w1'][k]), bf(p['w2'][k])

        xn = _layernorm(x, p['ln1_g'][k], p['ln1_b'][k])
        q = xn @ wq; kk = xn @ wk; v = xn @ wv
        s = jnp.einsum('bqe,bke->bqk', q, kk)
        f_out = jnp.einsum('bqk,bke->bqe', jax.nn.softmax(s, -1), v) @ wo

        xn2 = _layernorm(x, p['ln2_g'][k], p['ln2_b'][k])
        g_out = jax.nn.gelu(xn2 @ w1 + p['b1'][k]) @ w2 + p['b2'][k]

        x = x + f_out + g_out
    return x


def _init_params(key, num_blocks, d_model, d_ff):
    ks = jax.random.split(key, 8)
    def w(k, shape, fan_in):
        return jax.random.normal(k, shape, jnp.float32) / math.sqrt(fan_in)
    return {
        'ln1_g': jnp.ones((num_blocks, d_model), jnp.float32),
        'ln1_b': jnp.zeros((num_blocks, d_model), jnp.float32),
        'wq': w(ks[0], (num_blocks, d_model, d_model), d_model),
        'wk': w(ks[1], (num_blocks, d_model, d_model), d_model),
        'wv': w(ks[2], (num_blocks, d_model, d_model), d_model),
        'wo': w(ks[3], (num_blocks, d_model, d_model), d_model),
        'ln2_g': jnp.ones((num_blocks, d_model), jnp.float32),
        'ln2_b': jnp.zeros((num_blocks, d_model), jnp.float32),
        'w1': w(ks[4], (num_blocks, d_model, d_ff), d_model),
        'b1': 0.01 * jax.random.normal(ks[5], (num_blocks, d_ff), jnp.float32),
        'w2': w(ks[6], (num_blocks, d_ff, d_model), d_ff),
        'b2': 0.01 * jax.random.normal(ks[7], (num_blocks, d_model), jnp.float32),
    }


if __name__ == "__main__":
    # Small but lane-dense shapes: batch=2, seq=8, d_model=128, ffn=512, blocks=2.
    B, S, D, H, L = 2, 8, 128, 512, 2
    key = jax.random.PRNGKey(0)
    kx, kp = jax.random.split(key)
    x = jax.random.normal(kx, (B, S, D), jnp.float32)
    params = _init_params(kp, L, D, H)

    out = sequential_forward(x, params)
    out = jax.block_until_ready(out)

    ref = _reference(x, params)
    np.testing.assert_allclose(np.asarray(out), np.asarray(ref),
                               rtol=2e-2, atol=2e-2)
    print("KERNEL_OK")
</pallas_src>

<mosaic_0001>
module attributes {stable_mosaic.version = 11 : i64} {
  func.func @_stack_kernel(%arg0: i32, %arg1: memref<2x8x128xf32, #tpu.memory_space<any>>, %arg2: memref<1x1x128xf32, #tpu.memory_space<vmem>>, %arg3: memref<1x1x128xf32, #tpu.memory_space<vmem>>, %arg4: memref<1x128x384xbf16, #tpu.memory_space<vmem>>, %arg5: memref<1x128x128xbf16, #tpu.memory_space<vmem>>, %arg6: memref<1x1x128xf32, #tpu.memory_space<vmem>>, %arg7: memref<1x1x128xf32, #tpu.memory_space<vmem>>, %arg8: memref<1x128x512xbf16, #tpu.memory_space<vmem>>, %arg9: memref<1x1x512xf32, #tpu.memory_space<vmem>>, %arg10: memref<1x512x128xbf16, #tpu.memory_space<vmem>>, %arg11: memref<1x1x128xf32, #tpu.memory_space<vmem>>, %arg12: memref<2x8x128xf32, #tpu.memory_space<vmem>>, %arg13: memref<!tpu.dma_semaphore, #tpu.memory_space<semaphore_mem>>) attributes {dimension_semantics = [#tpu.dimension_semantics<arbitrary>], iteration_bounds = array<i64: 2>, scalar_prefetch = 0 : i64, scratch_operands = 1 : i64, tpu.core_type = #tpu.core_type<tc>, window_params = [{}, {transform_indices = @transform_1, window_bounds = array<i64: 1, 1, 128>}, {transform_indices = @transform_2, window_bounds = array<i64: 1, 1, 128>}, {transform_indices = @transform_3, window_bounds = array<i64: 1, 128, 384>}, {transform_indices = @transform_4, window_bounds = array<i64: 1, 128, 128>}, {transform_indices = @transform_5, window_bounds = array<i64: 1, 1, 128>}, {transform_indices = @transform_6, window_bounds = array<i64: 1, 1, 128>}, {transform_indices = @transform_7, window_bounds = array<i64: 1, 128, 512>}, {transform_indices = @transform_8, window_bounds = array<i64: 1, 1, 512>}, {transform_indices = @transform_9, window_bounds = array<i64: 1, 512, 128>}, {transform_indices = @transform_10, window_bounds = array<i64: 1, 1, 128>}, {pipeline_mode = #tpu.pipeline_mode<synchronous>, transform_indices = @transform_11, window_bounds = array<i64: 2, 8, 128>}]} {
    %c0_i32 = arith.constant 0 : i32
    %0 = arith.cmpi eq, %arg0, %c0_i32 : i32
    %1 = arith.extui %0 : i1 to i32
    %c0_i32_0 = arith.constant 0 : i32
    %2 = arith.cmpi ne, %1, %c0_i32_0 : i32
    scf.if %2 {
      tpu.enqueue_dma source(%arg1 : memref<2x8x128xf32, #tpu.memory_space<any>>) target(%arg12 : memref<2x8x128xf32, #tpu.memory_space<vmem>>) target_semaphore(%arg13 : memref<!tpu.dma_semaphore, #tpu.memory_space<semaphore_mem>>)
      tpu.wait_dma2 semaphore(%arg13 : memref<!tpu.dma_semaphore, #tpu.memory_space<semaphore_mem>>) src(%arg1 : memref<2x8x128xf32, #tpu.memory_space<any>>) dst(%arg12 : memref<2x8x128xf32, #tpu.memory_space<vmem>>)
    } else {
    }
    %c0 = arith.constant 0 : index
    %c0_1 = arith.constant 0 : index
    %c0_2 = arith.constant 0 : index
    %3 = vector.load %arg12[%c0, %c0_1, %c0_2] : memref<2x8x128xf32, #tpu.memory_space<vmem>>, vector<2x8x128xf32>
    %4 = vector.shape_cast %3 : vector<2x8x128xf32> to vector<16x128xf32>
    %c0_3 = arith.constant 0 : index
    %c0_4 = arith.constant 0 : index
    %c0_5 = arith.constant 0 : index
    %5 = vector.load %arg2[%c0_3, %c0_4, %c0_5] : memref<1x1x128xf32, #tpu.memory_space<vmem>>, vector<1x1x128xf32>
    %6 = vector.shape_cast %5 : vector<1x1x128xf32> to vector<1x128xf32>
    %c0_6 = arith.constant 0 : index
    %c0_7 = arith.constant 0 : index
    %c0_8 = arith.constant 0 : index
    %7 = vector.load %arg3[%c0_6, %c0_7, %c0_8] : memref<1x1x128xf32, #tpu.memory_space<vmem>>, vector<1x1x128xf32>
    %8 = vector.shape_cast %7 : vector<1x1x128xf32> to vector<1x128xf32>
    %cst = arith.constant dense<0.000000e+00> : vector<16xf32>
    %9 = vector.multi_reduction <add>, %4, %cst [1] : vector<16x128xf32> to vector<16xf32>
    %10 = vector.shape_cast %9 : vector<16xf32> to vector<16x1xf32>
    %cst_9 = arith.constant 1.280000e+02 : f32
    %11 = vector.broadcast %cst_9 : f32 to vector<16x1xf32>
    %12 = arith.divf %10, %11 : vector<16x1xf32>
    %13 = vector.broadcast %12 : vector<16x1xf32> to vector<16x128xf32>
    %14 = arith.subf %4, %13 : vector<16x128xf32>
    %15 = arith.mulf %14, %14 : vector<16x128xf32>
    %cst_10 = arith.constant dense<0.000000e+00> : vector<16xf32>
    %16 = vector.multi_reduction <add>, %15, %cst_10 [1] : vector<16x128xf32> to vector<16xf32>
    %17 = vector.shape_cast %16 : vector<16xf32> to vector<16x1xf32>
    %cst_11 = arith.constant 1.280000e+02 : f32
    %18 = vector.broadcast %cst_11 : f32 to vector<16x1xf32>
    %19 = arith.divf %17, %18 : vector<16x1xf32>
    %20 = vector.broadcast %12 : vector<16x1xf32> to vector<16x128xf32>
    %21 = arith.subf %4, %20 : vector<16x128xf32>
    %cst_12 = arith.constant 9.99999974E-6 : f32
    %22 = vector.broadcast %cst_12 : f32 to vector<16x1xf32>
    %23 = arith.addf %19, %22 : vector<16x1xf32>
    %24 = math.rsqrt %23 : vector<16x1xf32>
    %25 = vector.broadcast %24 : vector<16x1xf32> to vector<16x128xf32>
    %26 = arith.mulf %21, %25 : vector<16x128xf32>
    %27 = vector.broadcast %6 : vector<1x128xf32> to vector<16x128xf32>
    %28 = arith.mulf %26, %27 : vector<16x128xf32>
    %29 = vector.broadcast %8 : vector<1x128xf32> to vector<16x128xf32>
    %30 = arith.addf %28, %29 : vector<16x128xf32>
    %31 = arith.truncf %30 : vector<16x128xf32> to vector<16x128xbf16>
    %c0_13 = arith.constant 0 : index
    %c0_14 = arith.constant 0 : index
    %c0_15 = arith.constant 0 : index
    %32 = vector.load %arg4[%c0_13, %c0_14, %c0_15] : memref<1x128x384xbf16, #tpu.memory_space<vmem>>, vector<1x128x384xbf16>
    %33 = vector.shape_cast %32 : vector<1x128x384xbf16> to vector<128x384xbf16>
    %cst_16 = arith.constant dense<0.000000e+00> : vector<16x384xf32>
    %34 = tpu.matmul %31, %33, %cst_16 {dimension_numbers = #tpu.dot_dimension_numbers<[1], [0], [0], [1], [0, 0, 1, 1], [], []>} : vector<16x128xbf16>, vector<128x384xbf16>, vector<16x384xf32> -> vector<16x384xf32>
    %35 = vector.extract_strided_slice %34 {offsets = [0, 0], sizes = [16, 128], strides = [1, 1]} : vector<16x384xf32> to vector<16x128xf32>
    %36 = vector.shape_cast %35 : vector<16x128xf32> to vector<2x8x128xf32>
    %37 = arith.truncf %36 : vector<2x8x128xf32> to vector<2x8x128xbf16>
    %38 = vector.extract_strided_slice %34 {offsets = [0, 128], sizes = [16, 128], strides = [1, 1]} : vector<16x384xf32> to vector<16x128xf32>
    %39 = vector.shape_cast %38 : vector<16x128xf32> to vector<2x8x128xf32>
    %40 = arith.truncf %39 : vector<2x8x128xf32> to vector<2x8x128xbf16>
    %41 = vector.extract_strided_slice %34 {offsets = [0, 256], sizes = [16, 128], strides = [1, 1]} : vector<16x384xf32> to vector<16x128xf32>
    %42 = vector.shape_cast %41 : vector<16x128xf32> to vector<2x8x128xf32>
    %43 = arith.truncf %42 : vector<2x8x128xf32> to vector<2x8x128xbf16>
    "tpu.trace_start"() <{level = 10 : i32, message = "bqe,bke->bqk"}> : () -> ()
    %cst_17 = arith.constant dense<0.000000e+00> : vector<2x8x8xf32>
    %44 = tpu.matmul %37, %40, %cst_17 {dimension_numbers = #tpu.dot_dimension_numbers<[2], [2], [1], [1], [0, 0, 0, 1, 1, 1], [0], [0]>} : vector<2x8x128xbf16>, vector<2x8x128xbf16>, vector<2x8x8xf32> -> vector<2x8x8xf32>
    "tpu.trace_stop"() : () -> ()
    %cst_18 = arith.constant dense<0xFF800000> : vector<2x8xf32>
    %45 = vector.multi_reduction <maximumf>, %44, %cst_18 [2] : vector<2x8x8xf32> to vector<2x8xf32>
    %46 = vector.shape_cast %45 : vector<2x8xf32> to vector<2x8x1xf32>
    %47 = vector.broadcast %46 : vector<2x8x1xf32> to vector<2x8x8xf32>
    %48 = arith.subf %44, %47 : vector<2x8x8xf32>
    %49 = math.exp %48 : vector<2x8x8xf32>
    %cst_19 = arith.constant dense<0.000000e+00> : vector<2x8xf32>
    %50 = vector.multi_reduction <add>, %49, %cst_19 [2] : vector<2x8x8xf32> to vector<2x8xf32>
    %51 = vector.shape_cast %50 : vector<2x8xf32> to vector<2x8x1xf32>
    %52 = tpu.reciprocal %51 {approx = true} : vector<2x8x1xf32> -> vector<2x8x1xf32>
    %53 = vector.broadcast %52 : vector<2x8x1xf32> to vector<2x8x8xf32>
    %54 = arith.mulf %49, %53 : vector<2x8x8xf32>
    %55 = arith.truncf %54 : vector<2x8x8xf32> to vector<2x8x8xbf16>
    "tpu.trace_start"() <{level = 10 : i32, message = "bqk,bke->bqe"}> : () -> ()
    %cst_20 = arith.constant dense<0.000000e+00> : vector<2x8x128xf32>
    %56 = tpu.matmul %55, %43, %cst_20 {dimension_numbers = #tpu.dot_dimension_numbers<[2], [1], [1], [2], [0, 0, 0, 1, 1, 2], [0], [0]>} : vector<2x8x8xbf16>, vector<2x8x128xbf16>, vector<2x8x128xf32> -> vector<2x8x128xf32>
    "tpu.trace_stop"() : () -> ()
    %57 = vector.shape_cast %56 : vector<2x8x128xf32> to vector<16x128xf32>
    %58 = arith.truncf %57 : vector<16x128xf32> to vector<16x128xbf16>
    %c0_21 = arith.constant 0 : index
    %c0_22 = arith.constant 0 : index
    %c0_23 = arith.constant 0 : index
    %59 = vector.load %arg5[%c0_21, %c0_22, %c0_23] : memref<1x128x128xbf16, #tpu.memory_space<vmem>>, vector<1x128x128xbf16>
    %60 = vector.shape_cast %59 : vector<1x128x128xbf16> to vector<128x128xbf16>
    %cst_24 = arith.constant dense<0.000000e+00> : vector<16x128xf32>
    %61 = tpu.matmul %58, %60, %cst_24 {dimension_numbers = #tpu.dot_dimension_numbers<[1], [0], [0], [1], [0, 0, 1, 1], [], []>} : vector<16x128xbf16>, vector<128x128xbf16>, vector<16x128xf32> -> vector<16x128xf32>
    %c0_25 = arith.constant 0 : index
    %c0_26 = arith.constant 0 : index
    %c0_27 = arith.constant 0 : index
    %62 = vector.load %arg6[%c0_25, %c0_26, %c0_27] : memref<1x1x128xf32, #tpu.memory_space<vmem>>, vector<1x1x128xf32>
    %63 = vector.shape_cast %62 : vector<1x1x128xf32> to vector<1x128xf32>
    %c0_28 = arith.constant 0 : index
    %c0_29 = arith.constant 0 : index
    %c0_30 = arith.constant 0 : index
    %64 = vector.load %arg7[%c0_28, %c0_29, %c0_30] : memref<1x1x128xf32, #tpu.memory_space<vmem>>, vector<1x1x128xf32>
    %65 = vector.shape_cast %64 : vector<1x1x128xf32> to vector<1x128xf32>
    %cst_31 = arith.constant dense<0.000000e+00> : vector<16xf32>
    %66 = vector.multi_reduction <add>, %4, %cst_31 [1] : vector<16x128xf32> to vector<16xf32>
    %67 = vector.shape_cast %66 : vector<16xf32> to vector<16x1xf32>
    %cst_32 = arith.constant 1.280000e+02 : f32
    %68 = vector.broadcast %cst_32 : f32 to vector<16x1xf32>
    %69 = arith.divf %67, %68 : vector<16x1xf32>
    %70 = vector.broadcast %69 : vector<16x1xf32> to vector<16x128xf32>
    %71 = arith.subf %4, %70 : vector<16x128xf32>
    %72 = arith.mulf %71, %71 : vector<16x128xf32>
    %cst_33 = arith.constant dense<0.000000e+00> : vector<16xf32>
    %73 = vector.multi_reduction <add>, %72, %cst_33 [1] : vector<16x128xf32> to vector<16xf32>
    %74 = vector.shape_cast %73 : vector<16xf32> to vector<16x1xf32>
    %cst_34 = arith.constant 1.280000e+02 : f32
    %75 = vector.broadcast %cst_34 : f32 to vector<16x1xf32>
    %76 = arith.divf %74, %75 : vector<16x1xf32>
    %77 = vector.broadcast %69 : vector<16x1xf32> to vector<16x128xf32>
    %78 = arith.subf %4, %77 : vector<16x128xf32>
    %cst_35 = arith.constant 9.99999974E-6 : f32
    %79 = vector.broadcast %cst_35 : f32 to vector<16x1xf32>
    %80 = arith.addf %76, %79 : vector<16x1xf32>
    %81 = math.rsqrt %80 : vector<16x1xf32>
    %82 = vector.broadcast %81 : vector<16x1xf32> to vector<16x128xf32>
    %83 = arith.mulf %78, %82 : vector<16x128xf32>
    %84 = vector.broadcast %63 : vector<1x128xf32> to vector<16x128xf32>
    %85 = arith.mulf %83, %84 : vector<16x128xf32>
    %86 = vector.broadcast %65 : vector<1x128xf32> to vector<16x128xf32>
    %87 = arith.addf %85, %86 : vector<16x128xf32>
    %88 = arith.truncf %87 : vector<16x128xf32> to vector<16x128xbf16>
    %c0_36 = arith.constant 0 : index
    %c0_37 = arith.constant 0 : index
    %c0_38 = arith.constant 0 : index
    %89 = vector.load %arg8[%c0_36, %c0_37, %c0_38] : memref<1x128x512xbf16, #tpu.memory_space<vmem>>, vector<1x128x512xbf16>
    %90 = vector.shape_cast %89 : vector<1x128x512xbf16> to vector<128x512xbf16>
    %cst_39 = arith.constant dense<0.000000e+00> : vector<16x512xf32>
    %91 = tpu.matmul %88, %90, %cst_39 {dimension_numbers = #tpu.dot_dimension_numbers<[1], [0], [0], [1], [0, 0, 1, 1], [], []>} : vector<16x128xbf16>, vector<128x512xbf16>, vector<16x512xf32> -> vector<16x512xf32>
    %c0_40 = arith.constant 0 : index
    %c0_41 = arith.constant 0 : index
    %c0_42 = arith.constant 0 : index
    %92 = vector.load %arg9[%c0_40, %c0_41, %c0_42] : memref<1x1x512xf32, #tpu.memory_space<vmem>>, vector<1x1x512xf32>
    %93 = vector.shape_cast %92 : vector<1x1x512xf32> to vector<1x512xf32>
    %94 = vector.broadcast %93 : vector<1x512xf32> to vector<16x512xf32>
    %95 = arith.addf %91, %94 : vector<16x512xf32>
    %96 = arith.mulf %95, %95 : vector<16x512xf32>
    %97 = arith.mulf %95, %96 : vector<16x512xf32>
    %cst_43 = arith.constant 4.471500e-02 : f32
    %98 = vector.broadcast %cst_43 : f32 to vector<16x512xf32>
    %99 = arith.mulf %98, %97 : vector<16x512xf32>
    %100 = arith.addf %95, %99 : vector<16x512xf32>
    %cst_44 = arith.constant 0.797884583 : f32
    %101 = vector.broadcast %cst_44 : f32 to vector<16x512xf32>
    %102 = arith.mulf %101, %100 : vector<16x512xf32>
    %103 = math.tanh %102 : vector<16x512xf32>
    %cst_45 = arith.constant 1.000000e+00 : f32
    %104 = vector.broadcast %cst_45 : f32 to vector<16x512xf32>
    %105 = arith.addf %104, %103 : vector<16x512xf32>
    %cst_46 = arith.constant 5.000000e-01 : f32
    %106 = vector.broadcast %cst_46 : f32 to vector<16x512xf32>
    %107 = arith.mulf %106, %105 : vector<16x512xf32>
    %108 = arith.mulf %95, %107 : vector<16x512xf32>
    %109 = arith.truncf %108 : vector<16x512xf32> to vector<16x512xbf16>
    %c0_47 = arith.constant 0 : index
    %c0_48 = arith.constant 0 : index
    %c0_49 = arith.constant 0 : index
    %110 = vector.load %arg10[%c0_47, %c0_48, %c0_49] : memref<1x512x128xbf16, #tpu.memory_space<vmem>>, vector<1x512x128xbf16>
    %111 = vector.shape_cast %110 : vector<1x512x128xbf16> to vector<512x128xbf16>
    %cst_50 = arith.constant dense<0.000000e+00> : vector<16x128xf32>
    %112 = tpu.matmul %109, %111, %cst_50 {dimension_numbers = #tpu.dot_dimension_numbers<[1], [0], [0], [1], [0, 0, 1, 1], [], []>} : vector<16x512xbf16>, vector<512x128xbf16>, vector<16x128xf32> -> vector<16x128xf32>
    %c0_51 = arith.constant 0 : index
    %c0_52 = arith.constant 0 : index
    %c0_53 = arith.constant 0 : index
    %113 = vector.load %arg11[%c0_51, %c0_52, %c0_53] : memref<1x1x128xf32, #tpu.memory_space<vmem>>, vector<1x1x128xf32>
    %114 = vector.shape_cast %113 : vector<1x1x128xf32> to vector<1x128xf32>
    %115 = vector.broadcast %114 : vector<1x128xf32> to vector<16x128xf32>
    %116 = arith.addf %112, %115 : vector<16x128xf32>
    %117 = arith.addf %61, %116 : vector<16x128xf32>
    %118 = vector.shape_cast %117 : vector<16x128xf32> to vector<2x8x128xf32>
    %119 = arith.addf %3, %118 : vector<2x8x128xf32>
    %c0_54 = arith.constant 0 : index
    %c0_55 = arith.constant 0 : index
    %c0_56 = arith.constant 0 : index
    %120 = vector.load %arg12[%c0_54, %c0_55, %c0_56] : memref<2x8x128xf32, #tpu.memory_space<vmem>>, vector<2x8x128xf32>
    tpu.vector_store %arg12[%c0_54, %c0_55, %c0_56], %119 {strides = array<i32>} : memref<2x8x128xf32, #tpu.memory_space<vmem>>, vector<2x8x128xf32>,
    return
  }
  func.func @transform_1(%arg0: i32) -> (i32, i32, i32) {
    %c0_i32 = arith.constant 0 : i32
    %c0_i32_0 = arith.constant 0 : i32
    %c0_i32_1 = arith.constant 0 : i32
    return %arg0, %c0_i32, %c0_i32_0 : i32, i32, i32
  }
  func.func @transform_2(%arg0: i32) -> (i32, i32, i32) {
    %c0_i32 = arith.constant 0 : i32
    %c0_i32_0 = arith.constant 0 : i32
    %c0_i32_1 = arith.constant 0 : i32
    return %arg0, %c0_i32, %c0_i32_0 : i32, i32, i32
  }
  func.func @transform_3(%arg0: i32) -> (i32, i32, i32) {
    %c0_i32 = arith.constant 0 : i32
    %c0_i32_0 = arith.constant 0 : i32
    %c0_i32_1 = arith.constant 0 : i32
    return %arg0, %c0_i32, %c0_i32_0 : i32, i32, i32
  }
  func.func @transform_4(%arg0: i32) -> (i32, i32, i32) {
    %c0_i32 = arith.constant 0 : i32
    %c0_i32_0 = arith.constant 0 : i32
    %c0_i32_1 = arith.constant 0 : i32
    return %arg0, %c0_i32, %c0_i32_0 : i32, i32, i32
  }
  func.func @transform_5(%arg0: i32) -> (i32, i32, i32) {
    %c0_i32 = arith.constant 0 : i32
    %c0_i32_0 = arith.constant 0 : i32
    %c0_i32_1 = arith.constant 0 : i32
    return %arg0, %c0_i32, %c0_i32_0 : i32, i32, i32
  }
  func.func @transform_6(%arg0: i32) -> (i32, i32, i32) {
    %c0_i32 = arith.constant 0 : i32
    %c0_i32_0 = arith.constant 0 : i32
    %c0_i32_1 = arith.constant 0 : i32
    return %arg0, %c0_i32, %c0_i32_0 : i32, i32, i32
  }
  func.func @transform_7(%arg0: i32) -> (i32, i32, i32) {
    %c0_i32 = arith.constant 0 : i32
    %c0_i32_0 = arith.constant 0 : i32
    %c0_i32_1 = arith.constant 0 : i32
    return %arg0, %c0_i32, %c0_i32_0 : i32, i32, i32
  }
  func.func @transform_8(%arg0: i32) -> (i32, i32, i32) {
    %c0_i32 = arith.constant 0 : i32
    %c0_i32_0 = arith.constant 0 : i32
    %c0_i32_1 = arith.constant 0 : i32
    return %arg0, %c0_i32, %c0_i32_0 : i32, i32, i32
  }
  func.func @transform_9(%arg0: i32) -> (i32, i32, i32) {
    %c0_i32 = arith.constant 0 : i32
    %c0_i32_0 = arith.constant 0 : i32
    %c0_i32_1 = arith.constant 0 : i32
    return %arg0, %c0_i32, %c0_i32_0 : i32, i32, i32
  }
  func.func @transform_10(%arg0: i32) -> (i32, i32, i32) {
    %c0_i32 = arith.constant 0 : i32
    %c0_i32_0 = arith.constant 0 : i32
    %c0_i32_1 = arith.constant 0 : i32
    return %arg0, %c0_i32, %c0_i32_0 : i32, i32, i32
  }
  func.func @transform_11(%arg0: i32) -> (i32, i32, i32) {
    %c0_i32 = arith.constant 0 : i32
    %c0_i32_0 = arith.constant 0 : i32
    %c0_i32_1 = arith.constant 0 : i32
    %c0_i32_2 = arith.constant 0 : i32
    return %c0_i32, %c0_i32_0, %c0_i32_1 : i32, i32, i32
  }
}

</mosaic_0001>

<bundles_post_ra>
// kernel: tpu_custom_call.1
= control target key start
LH: loop header
LB: loop body
LE: loop exit
PB: predicated region body
PF: predicated region fallthrough
CT: control target
= control target key end

     0   :  { %s3509_s0 = inlined_call_operand.hbm [shape: f32[2,8,128], index: 0, kind: input, shape index: {}]   ;;  %s3510_s1 = inlined_call_operand.hbm [shape: f32[2,1,128], index: 1, kind: input, shape index: {}]   ;;  %s3511_s2 = inlined_call_operand.hbm [shape: f32[2,1,128], index: 2, kind: input, shape index: {}]   ;;  %s3512_s3 = inlined_call_operand.hbm [shape: bf16[2,128,384], index: 3, kind: input, shape index: {}]   ;;  %s3513_s4 = inlined_call_operand.hbm [shape: bf16[2,128,128], index: 4, kind: input, shape index: {}]   ;;  %s3514_s5 = inlined_call_operand.vmem [shape: f32[2,1,128], index: 5, kind: input, shape index: {}]   ;;  %s3515_s6 = inlined_call_operand.vmem [shape: f32[2,1,128], index: 6, kind: input, shape index: {}]   ;;  %s3516_s7 = inlined_call_operand.hbm [shape: bf16[2,128,512], index: 7, kind: input, shape index: {}]   ;;  %s3517_s8 = inlined_call_operand.hbm [shape: f32[2,1,512], index: 8, kind: input, shape index: {}]   ;;  %s3518_s9 = inlined_call_operand.hbm [shape: bf16[2,512,128], index: 9, kind: input, shape index: {}]   ;;  %s3519_s10 = inlined_call_operand.vmem [shape: f32[2,1,128], index: 10, kind: input, shape index: {}]   ;;  %s3520_s11 = inlined_call_operand.hbm [shape: f32[2,8,128], index: 11, kind: output, shape index: {}]  }
   0x1   :  { %3532 = sst [smem:[#allocation29_spill]] %s3511_s2 }
   0x2   :  { %3533 = sst [smem:[#allocation30_spill]] %s3513_s4 }
   0x3   :  { %3534 = sst [smem:[#allocation31_spill]] %s3514_s5 }
   0x4   :  { %3535 = sst [smem:[#allocation32_spill]] %s3515_s6 }
   0x5   :  { %3536 = sst [smem:[#allocation33_spill]] %s3519_s10 }
   0x6   :  { %3537 = sst [smem:[#allocation34_spill]] %s3520_s11 }
   0x7   :  { %16 = vsyncpa [#allocation4], 0 }
   0x8   :  { %18 = vsyncpa [#allocation4 + $0x1], 0 }
   0x9   :  { %19 = vsyncpa [#allocation7], 0 }
   0xa   :  { %21 = vsyncpa [#allocation7 + $0x1], 0 }
   0xb   :  { %22 = vsyncpa [#allocation10], 0 }
   0xc   :  { %24 = vsyncpa [#allocation10 + $0x1], 0 }
   0xd   :  { %25 = vsyncpa [#allocation13], 0 }
   0xe   :  { %27 = vsyncpa [#allocation13 + $0x1], 0 }
   0xf   :  { %28 = vsyncpa [#allocation5], 0  ;;  %s3012_s17 = smov 0   ;;  %s3014_s18 = smov 0  }
  0x10   :  { %s3016_s19 = smov 0   ;;  %s3018_s20 = smov 0  }
  0x11 LB: > { %3538 = sst [smem:[#allocation26_spill]] %s2936_s19  ;;  %s3031_s21 = sadd.s32 4294967295, %s2940_s20   ;;  %s2940_s20 = sphi %s3018_s20, %s3558_s20   ;;  %s2936_s19 = sphi %s3016_s19, %s3560_s19   ;;  %s2932_s18 = sphi %s3014_s18, %s3562_s18   ;;  %s2928_s17 = sphi %s3012_s17, %s3561_s17  }
  0x12   : > { %s3034_s22 = sadd.s32 1, %s2940_s20   ;;  %s41_s24 = sadd.s32 1, %s2936_s19 }
  0x13   : > { %3539 = sst [smem:[#allocation27_spill]] %s3034_s22  ;;  %s38_s23 = ssub.s32 %s2940_s20, %s3034_s22 }
  0x14   : > { %p39_p0 = scmp.eq.s32.totalorder %s38_s23, 0  ;;  %p48_p1 = scmp.ne.s32.totalorder %s2936_s19, %s2932_s18 }
  0x15   : > { %p49_p2 = scmp.eq.s32.totalorder %s2940_s20, 0  ;;  %p54_p3 = scmp.ne.s32.totalorder %s2932_s18, %s2928_s17 }
  0x16   : > { %s3044_s25 = scalar_select %p39_p0, %s2936_s19, %s41_s24  }
  0x17   : > { %p50_p4 = por %p49_p2, %p48_p1  ;;  %p55_p5 = scmp.eq.s32.totalorder %s3031_s21, 0 }
  0x18   : > { %3540 = sst [smem:[#allocation28_spill]] %s3044_s25  ;;  %p2537_p6 = scmp.lt.s32.totalorder %s2940_s20, 2 }
  0x19   : > { %p3050_p7 = por %p55_p5, %p54_p3  ;;  %s3055_s27 = sand.u32 1, %s2936_s19  }
  0x1a   : > { %p3057_p8 = pnand %p2537_p6, %p50_p4  ;;  %s3062_s29 = sand.u32 1, %s2940_s20  }
  0x1b   : > { %s3543_s2 = sld [smem:[#allocation29_spill]]  ;;  %s353_s15 = scalar_lea.vmem [#allocation6], %s3055_s27 }
  0x1c   : > { %s360_s16 = sshll.u32 %s353_s15, 4  ;;  %s3524_s17 = scalar_lea.sflag [#allocation7], %s3062_s29  ;;  %s361_s16 = int_to_ptr.vmem [resolvable:$true] %s360_s16 }
  0x1d   : > { %p3072_p10 = pneg %p3057_p8 }
  0x21   : > { %s356_s13 = scalar_lea.hbm %s3543_s2, %s2940_s20 }
  0x22   : > { %s358_s14 = sshll.u32 %s356_s13, 4  ;;  %s2627_s13 = scalar_lea.hbm %s3543_s2, 2  ;;  %s359_s14 = int_to_ptr.hbm [resolvable:$true] %s358_s14 }
  0x23   : > { %s2620_s23 = sshra.s32 %s359_s14, 4  ;;  %s2621_s23 = int_to_ptr.hbm [resolvable:$true] %s2620_s23 }
  0x24   : > { %s2622_s24 = scalar_lea.hbm %s2621_s23, 1  ;;  %p2628_p13 = scmp.lt.s32.totalorder %s2621_s23, %s3543_s2 }
  0x25   : > { %p2623_p9 = scmp.ne.s32.totalorder %s2621_s23, %s2622_s24  ;;  %p2629_p0 = scmp.lt.s32.totalorder %s2627_s13, %s2622_s24 }
  0x27   : > { %p2625_p11 = pnand %p3072_p10, %p2623_p9  ;;  %p2630_p1 = por %p2629_p0, %p2628_p13 }
  0x29   : > { %p2626_p12 = pneg %p2625_p11 }
  0x2b   : > { %p2631_p2 = pnand %p2630_p1, %p2626_p12 }
  0x2d   : > { %2634 = shalt.err (!%p2631_p2)
}
  0x2e   : > { %2521 = dma.hbm_to_vmem [thread:$0]  (!%p3057_p8), %s359_s14, 16, %s361_s16, %s3524_s17  }
  0x2f   : > { %p1995_p3 = scmp.ge.s32.totalorder %s2940_s20, 1  ;;  %p490_p4 = scmp.lt.s32.totalorder %s2940_s20, 3 }
  0x30   : > { %s1984_s30 = sshll.u32 %s3055_s27, 6  ;;  %s2392_s19 = sshll.u32 %s2940_s20, 6 }
  0x31   : > { %p3092_p6 = pnand %p1995_p3, %p490_p4  ;;  %s3546_s4 = sld [smem:[#allocation30_spill]] }
  0x32   : > { %s393_s2 = scalar_lea.vmem [#allocation9], %s1984_s30  ;;  %s3531_s11 = scalar_lea.sflag [#allocation10], %s3062_s29 }
  0x33   : > { %s401_s22 = sshll.u32 %s393_s2, 4  ;;  %s402_s22 = int_to_ptr.vmem [resolvable:$true] %s401_s22 }
  0x37   : > { %s398_s13 = scalar_lea.hbm %s3546_s4, %s2392_s19  ;;  %s2657_s6 = scalar_lea.hbm %s3546_s4, 128 }
  0x38   : > { %s399_s15 = sshll.u32 %s398_s13, 4  ;;  %s400_s15 = int_to_ptr.hbm [resolvable:$true] %s399_s15 }
  0x39   : > { %s2650_s14 = sshra.s32 %s400_s15, 4  ;;  %s2651_s14 = int_to_ptr.hbm [resolvable:$true] %s2650_s14 }
  0x3a   : > { %s2652_s16 = scalar_lea.hbm %s2651_s14, 64  ;;  %p2658_p13 = scmp.lt.s32.totalorder %s2651_s14, %s3546_s4 }
  0x3b   : > { %p2653_p9 = scmp.ne.s32.totalorder %s2651_s14, %s2652_s16  ;;  %p2659_p0 = scmp.lt.s32.totalorder %s2657_s6, %s2652_s16 }
  0x3d   : > { %p2655_p11 = pnand %p2653_p9, %p3072_p10  ;;  %p2660_p1 = por %p2659_p0, %p2658_p13 }
  0x3f   : > { %p2656_p12 = pneg %p2655_p11 }
  0x41   : > { %p2661_p2 = pnand %p2660_p1, %p2656_p12 }
  0x43   : > { %2664 = shalt.err (!%p2661_p2)
}
  0x44   : > { %s3528_s2 = smov 64   ;;  %s3529_s30 = smov 4  }
  0x45   : > { %2527 = dma.hbm_to_vmem [thread:$0]  (!%p3057_p8), %s400_s15, 1024, %s402_s22, %s3531_s11, %s3528_s2, %s3528_s2, %s3529_s30  }
  0x46   : > { %s1990_s5 = sshll.u32 %s3055_s27, 2  ;;  %s1991_s10 = sshll.u32 %s2940_s20, 2 }
  0x47   : > { %s453_s19 = scalar_lea.hbm %s3517_s8, %s1991_s10  ;;  %s449_s12 = scalar_lea.vmem [#allocation12], %s1990_s5 }
  0x48   : > { %s457_s13 = sshll.u32 %s449_s12, 4  ;;  %s455_s14 = sshll.u32 %s453_s19, 4  ;;  %s458_s13 = int_to_ptr.vmem [resolvable:$true] %s457_s13  ;;  %s456_s14 = int_to_ptr.hbm [resolvable:$true] %s455_s14 }
  0x49   : > { %s3530_s16 = scalar_lea.sflag [#allocation13], %s3062_s29  ;;  %s2680_s24 = sshra.s32 %s456_s14, 4  ;;  %s2681_s24 = int_to_ptr.hbm [resolvable:$true] %s2680_s24 }
  0x4a   : > { %s2682_s4 = scalar_lea.hbm %s2681_s24, 4  ;;  %s2687_s2 = scalar_lea.hbm %s3517_s8, 8 }
  0x4b   : > { %p2683_p3 = scmp.ne.s32.totalorder %s2681_s24, %s2682_s4  ;;  %p2688_p11 = scmp.lt.s32.totalorder %s2681_s24, %s3517_s8 }
  0x4c   : > { %p2689_p12 = scmp.lt.s32.totalorder %s2687_s2, %s2682_s4 }
  0x4d   : > { %p2685_p4 = pnand %p2683_p3, %p3072_p10 }
  0x4e   : > { %p2690_p13 = por %p2689_p12, %p2688_p11 }
  0x4f   : > { %p2686_p9 = pneg %p2685_p4 }
  0x51   : > { %p2691_p0 = pnand %p2690_p13, %p2686_p9 }
  0x53   : > { %2694 = shalt.err (!%p2691_p0)
}
  0x54   : > { %2533 = dma.hbm_to_vmem [thread:$0]  (!%p3057_p8), %s456_s14, 64, %s458_s13, %s3530_s16  }
  0x55   : > { %s339_s17 = scalar_lea.hbm %s3510_s1, %s2940_s20  ;;  %s336_s30 = scalar_lea.vmem [#allocation3], %s3055_s27 }
  0x56   : > { %s341_s19 = sshll.u32 %s339_s17, 4  ;;  %s343_s12 = sshll.u32 %s336_s30, 4  ;;  %s342_s19 = int_to_ptr.hbm [resolvable:$true] %s341_s19  ;;  %s344_s12 = int_to_ptr.vmem [resolvable:$true] %s343_s12 }
  0x57   : > { %s334_s4 = scalar_lea.sflag [#allocation4], %s3055_s27  ;;  %s2710_s2 = sshra.s32 %s342_s19, 4  ;;  %s2711_s2 = int_to_ptr.hbm [resolvable:$true] %s2710_s2 }
  0x58   : > { %s2712_s24 = scalar_lea.hbm %s2711_s2, 1  ;;  %s2717_s13 = scalar_lea.hbm %s3510_s1, 2 }
  0x59   : > { %p2713_p1 = scmp.ne.s32.totalorder %s2711_s2, %s2712_s24  ;;  %p2718_p4 = scmp.lt.s32.totalorder %s2711_s2, %s3510_s1 }
  0x5a   : > { %p2719_p9 = scmp.lt.s32.totalorder %s2717_s13, %s2712_s24 }
  0x5b   : > { %p2715_p2 = pnand %p2713_p1, %p3072_p10 }
  0x5c   : > { %p2720_p11 = por %p2719_p9, %p2718_p4 }
  0x5d   : > { %p2716_p3 = pneg %p2715_p2 }
  0x5f   : > { %p2721_p12 = pnand %p2720_p11, %p2716_p3 }
  0x61   : > { %2724 = shalt.err (!%p2721_p12)
}
  0x62   : > { %2518 = dma.hbm_to_vmem [thread:$0]  (!%p3057_p8), %s342_s19, 16, %s344_s12, %s334_s4  }
  0x63   : > { %s2491_s5 = smul.u32 192, %s3055_s27  ;;  %s1987_s17 = sshll.u32 %s3055_s27, 8 }
  0x64   : > { %s2492_s10 = smul.u32 192, %s2940_s20  ;;  %s2747_s4 = scalar_lea.hbm %s3512_s3, 384 }
  0x65   : > { %s371_s14 = scalar_lea.vmem [#allocation8], %s2491_s5 }
  0x66   : > { %s376_s15 = scalar_lea.hbm %s3512_s3, %s2492_s10  ;;  %s379_s2 = sshll.u32 %s371_s14, 4  ;;  %s380_s2 = int_to_ptr.vmem [resolvable:$true] %s379_s2 }
  0x67   : > { %s377_s24 = sshll.u32 %s376_s15, 4  ;;  %s378_s24 = int_to_ptr.hbm [resolvable:$true] %s377_s24 }
  0x68   : > { %s2740_s13 = sshra.s32 %s378_s24, 4  ;;  %s2741_s13 = int_to_ptr.hbm [resolvable:$true] %s2740_s13 }
  0x69   : > { %s2742_s6 = scalar_lea.hbm %s2741_s13, 192  ;;  %p2748_p2 = scmp.lt.s32.totalorder %s2741_s13, %s3512_s3 }
  0x6a   : > { %p2743_p13 = scmp.ne.s32.totalorder %s2741_s13, %s2742_s6  ;;  %p2749_p3 = scmp.lt.s32.totalorder %s2747_s4, %s2742_s6 }
  0x6c   : > { %p2745_p0 = pnand %p2743_p13, %p3072_p10  ;;  %p2750_p4 = por %p2749_p3, %p2748_p2 }
  0x6e   : > { %p2746_p1 = pneg %p2745_p0 }
  0x70   : > { %p2751_p9 = pnand %p2750_p4, %p2746_p1 }
  0x72   : > { %2754 = shalt.err (!%p2751_p9)
}
  0x73   : > { %s2944_s5 = smov 192   ;;  %s2945_s10 = smov 12  }
  0x74   : > { %s3547_s30 = scalar_lea.sflag [#allocation7], %s3062_s29  ;;  %s2393_s22 = sshll.u32 %s2940_s20, 8 }
  0x75   : > { %2524 = dma.hbm_to_vmem [thread:$0]  (!%p3057_p8), %s378_s24, 3072, %s380_s2, %s3547_s30, %s2944_s5, %s2944_s5, %s2945_s10  }
  0x76   : > { %s427_s15 = scalar_lea.vmem [#allocation11], %s1987_s17  ;;  %s432_s13 = scalar_lea.hbm %s3516_s7, %s2393_s22 }
  0x77   : > { %s435_s14 = sshll.u32 %s427_s15, 4  ;;  %s433_s6 = sshll.u32 %s432_s13, 4  ;;  %s436_s14 = int_to_ptr.vmem [resolvable:$true] %s435_s14  ;;  %s434_s6 = int_to_ptr.hbm [resolvable:$true] %s433_s6 }
  0x78   : > { %s2770_s19 = sshra.s32 %s434_s6, 4  ;;  %s2777_s20 = scalar_lea.hbm %s3516_s7, 512  ;;  %s2771_s19 = int_to_ptr.hbm [resolvable:$true] %s2770_s19 }
  0x79   : > { %s2772_s12 = scalar_lea.hbm %s2771_s19, 256  ;;  %p2778_p0 = scmp.lt.s32.totalorder %s2771_s19, %s3516_s7 }
  0x7a   : > { %p2773_p11 = scmp.ne.s32.totalorder %s2771_s19, %s2772_s12  ;;  %p2779_p1 = scmp.lt.s32.totalorder %s2777_s20, %s2772_s12 }
  0x7c   : > { %p2775_p12 = pnand %p2773_p11, %p3072_p10  ;;  %p2780_p2 = por %p2779_p1, %p2778_p0 }
  0x7e   : > { %p2776_p13 = pneg %p2775_p12 }
  0x80   : > { %p2781_p3 = pnand %p2780_p2, %p2776_p13 }
  0x82   : > { %2784 = shalt.err (!%p2781_p3)
}
  0x83   : > { %s2946_s10 = smov 256   ;;  %s2947_s30 = smov 16  }
  0x84   : > { %s3548_s15 = scalar_lea.sflag [#allocation10], %s3062_s29  ;;  %s473_s13 = scalar_lea.hbm %s3518_s9, %s2393_s22 }
  0x85   : > { %2530 = dma.hbm_to_vmem [thread:$0]  (!%p3057_p8), %s434_s6, 4096, %s436_s14, %s3548_s15, %s2946_s10, %s2946_s10, %s2947_s30  }
  0x86   : > { %s474_s4 = sshll.u32 %s473_s13, 4  ;;  %s468_s19 = scalar_lea.vmem [#allocation14], %s1987_s17  ;;  %s475_s4 = int_to_ptr.hbm [resolvable:$true] %s474_s4 }
  0x87   : > { %s476_s12 = sshll.u32 %s468_s19, 4  ;;  %s2800_s2 = sshra.s32 %s475_s4, 4  ;;  %s477_s12 = int_to_ptr.vmem [resolvable:$true] %s476_s12  ;;  %s2801_s2 = int_to_ptr.hbm [resolvable:$true] %s2800_s2 }
  0x88   : > { %s2802_s20 = scalar_lea.hbm %s2801_s2, 256  ;;  %s2807_s14 = scalar_lea.hbm %s3518_s9, 512 }
  0x89   : > { %p2803_p4 = scmp.ne.s32.totalorder %s2801_s2, %s2802_s20  ;;  %p2808_p12 = scmp.lt.s32.totalorder %s2801_s2, %s3518_s9 }
  0x8a   : > { %p2809_p13 = scmp.lt.s32.totalorder %s2807_s14, %s2802_s20 }
  0x8b   : > { %p2805_p9 = pnand %p2803_p4, %p3072_p10 }
  0x8c   : > { %p2810_p0 = por %p2809_p13, %p2808_p12 }
  0x8d   : > { %p2806_p11 = pneg %p2805_p9 }
  0x8f   : > { %p2811_p1 = pnand %p2810_p0, %p2806_p11 }
  0x91   : > { %2814 = shalt.err (!%p2811_p1)
}
  0x92   : > { %s3549_s27 = smov 4   ;;  %s3550_s17 = smov 64  }
  0x93   : > { %s3551_s25 = scalar_lea.sflag [#allocation13], %s3062_s29  ;;  %494 = sbr.rel (%p3092_p6) target bundleno = 1313 (0x521), region = 60 }
  0x94   : > { %2536 = dma.hbm_to_vmem [thread:$0]  (!%p3057_p8), %s475_s4, 4096, %s477_s12, %s3551_s25, %s3550_s17, %s3550_s17, %s3549_s27  }
  0x95   : > { %s3208_s22 = sand.u32 (!%p3092_p6), 1, %s2932_s18  }
  0x96   : > { %s497_s30 = scalar_lea.sflag (!%p3092_p6), [#allocation4], %s3208_s22 }
  0x98   : > { %2903 = dma.done.wait (%p3050_p7), %s497_s30, 16  }
  0x99   : > { %2905 = vsyncadd (%p3050_p7), %s497_s30, 4294967280  ;;  %s505_s28 = sand.u32 1, %s3031_s21  }
  0x9a   : > { %s506_s29 = scalar_lea.sflag [#allocation7], %s505_s28 }
  0x9b   : > { %2907 = dma.done.wait (%p3050_p7), %s506_s29, 3088  }
  0x9c   : > { %2909 = vsyncadd (%p3050_p7), %s506_s29, 4294964208  ;;  %s2493_s11 = smul.u32 192, %s3208_s22  ;;  %s1996_s16 = sshll.u32 %s3208_s22, 6 }
  0x9d   : > { %s525_s4 = scalar_lea.sflag [#allocation10], %s505_s28  ;;  %s3226_s19 = scalar_lea.vmem [#allocation9], %s1996_s16 }
  0x9e   : > { %s3224_s13 = scalar_lea.vmem [#allocation8], %s2493_s11 }
  0x9f   : > { %2911 = dma.done.wait (%p3050_p7), %s525_s4, 5120  }
  0xa0   : > { %2913 = vsyncadd (%p3050_p7), %s525_s4, 4294962176  ;;  %s1997_s12 = sshll.u32 %s3208_s22, 8  ;;  %s1998_s2 = sshll.u32 %s3208_s22, 2 }
  0xa1   : > { %s3234_s20 = scalar_lea.vmem [#allocation11], %s1997_s12  ;;  %s545_s24 = scalar_lea.sflag [#allocation13], %s505_s28 }
  0xa2   : > { %s3236_s5 = scalar_lea.vmem [#allocation12], %s1998_s2 }
  0xa3   : > { %2915 = dma.done.wait (%p3050_p7), %s545_s24, 4160  }
  0xa4   : > { %2917 = vsyncadd (%p3050_p7), %s545_s24, 4294963136  ;;  %p628_p8 = scmp.lt.s32.totalorder %s3031_s21, 1  ;;  %s649_s10 = sshll.u32 %s3509_s0, 4  ;;  %s650_s10 = int_to_ptr.hbm [resolvable:$true] %s649_s10 }
  0xa5   : > { %s3552_s30 = sld [smem:[#allocation31_spill]]  ;;  %s2948_s14 = smov [#allocation15]  }
  0xa6   : > { %s3247_s27 = scalar_select %p628_p8, %s3031_s21, 1 }
  0xa7   : > { %s3553_s11 = sld [smem:[#allocation32_spill]]  ;;  %s3261_s6 = sshll.u32 %s2948_s14, 4  ;;  %s652_s6 = int_to_ptr.vmem [resolvable:$true] %s3261_s6 }
  0xa8   : > { %s3554_s24 = sld [smem:[#allocation33_spill]]  ;;  %s3268_s15 = scalar_lea.vmem [#allocation14], %s1997_s12 }
  0xa9   : > { %2509 = dma.hbm_to_vmem [thread:$0]  (%p55_p5), %s650_s10, 256, %s652_s6, [#allocation2] }
  0xab   : > { %s630_s26 = scalar_lea.vmem %s3552_s30, %s3247_s27 }
  0xad   : > { %s633_s16 = scalar_lea.vmem %s3553_s11, %s3247_s27 }
  0xae   : > { %s636_s23 = scalar_lea.vmem %s3554_s24, %s3247_s27 }
  0xaf   : > { %2919 = dma.done.wait (%p55_p5), [#allocation2], 256 }
  0xb0   : > { %2921 = vsyncadd (%p55_p5), [#allocation2], 4294967040  ;;  %v659_v0 = vld [vmem:[#allocation15] sm:$0xff]  ;;  %v660_v1 = vld [vmem:[#allocation15 + $0x8] sm:$0xff]  ;;  %v2949_v2 = vmov 128.0   ;;  %s3556_s12 = scalar_lea.vmem [#allocation6], %s3208_s22 }
  0xb1   : > { %663 = vadd.xlane.f32.xlu0 %v659_v0  ;;  %2588 = vrcp.f32 %v2949_v2  ;;  %v2416_v5 = vld [vmem:[%s3224_s13 + $0xac] sm:$0xf]  ;;  %v2089_v6 = vld [vmem:[%s3224_s13 + $0xb4] sm:$0xf0]  ;;  %v2095_v7 = vld [vmem:[%s3224_s13 + $0xb0] sm:$0xf] }
  0xb2   : > { %v2092_v8 = vor.u32 %v2416_v5, %v2089_v6  ;;  %v2418_v9 = vld [vmem:[%s3224_s13 + $0xb8] sm:$0xf0]  ;;  %v2413_v10 = vld [vmem:[%s3224_s13 + $0x94] sm:$0xf]  ;;  %v2077_v11 = vld [vmem:[%s3224_s13 + $0x9c] sm:$0xf0] }
  0xb3   : > { %v2096_v12 = vor.u32 %v2418_v9, %v2095_v7  ;;  %v2083_v13 = vld [vmem:[%s3224_s13 + $0x98] sm:$0xf]  ;;  %v2415_v14 = vld [vmem:[%s3224_s13 + $0xa0] sm:$0xf0]  ;;  %v2080_v16 = vor.u32 %v2413_v10, %v2077_v11  ;;  %v2410_v29 = vld [vmem:[%s3224_s13 + $0x7c] sm:$0xf] }
  0xb4   : > { %895 = vmatpush.bf16.msra.mxu1 %v2092_v8  ;;  %v2084_v17 = vor.u32 %v2415_v14, %v2083_v13  ;;  %v2065_v30 = vld [vmem:[%s3224_s13 + $0x84] sm:$0xf0]  ;;  %v2071_v31 = vld [vmem:[%s3224_s13 + $0x80] sm:$0xf]  ;;  %v2412_v33 = vld [vmem:[%s3224_s13 + $0x88] sm:$0xf0] }
  0xb5   : > { %909 = vmatpush.bf16.msra.mxu2 %v2096_v12  ;;  %v2068_v32 = vor.u32 %v2410_v29, %v2065_v30  ;;  %v2072_v34 = vor.u32 %v2412_v33, %v2071_v31  ;;  %v2407_v35 = vld [vmem:[%s3224_s13 + $0x64] sm:$0xf]  ;;  %v2053_v36 = vld [vmem:[%s3224_s13 + $0x6c] sm:$0xf0]  ;;  %v2059_v37 = vld [vmem:[%s3224_s13 + $0x68] sm:$0xf] }
  0xb6   : > { %v2056_v38 = vor.u32 %v2407_v35, %v2053_v36  ;;  %v2409_v39 = vld [vmem:[%s3224_s13 + $0x70] sm:$0xf0]  ;;  %v2087_v40 = vld [vmem:[%s3224_s13 + $0xa8] sm:$0xf]  ;;  %v2404_v44 = vld [vmem:[%s3224_s13 + $0x4c] sm:$0xf] }
  0xb7   : > { %v2589_v3 = vpop.eup %2588  ;;  %v2417_v41 = vld [vmem:[%s3224_s13 + $0xb0] sm:$0xf0]  ;;  %v2060_v42 = vor.u32 %v2409_v39, %v2059_v37  ;;  %v2041_v45 = vld [vmem:[%s3224_s13 + $0x54] sm:$0xf0]  ;;  %v2047_v46 = vld [vmem:[%s3224_s13 + $0x50] sm:$0xf] }
  0xb8   : > { %v668_v4 = vmul.f32 128.0, %v2589_v3  ;;  %896 = vmatpush.bf16.msra.mxu1 %v2080_v16  ;;  %vm672_vm0 = vweird.f32 %v2589_v3  ;;  %v2088_v43 = vor.u32 %v2417_v41, %v2087_v40  ;;  %v2044_v47 = vor.u32 %v2404_v44, %v2041_v45  ;;  %v2406_v48 = vld [vmem:[%s3224_s13 + $0x58] sm:$0xf0]  ;;  %v2075_v49 = vld [vmem:[%s3224_s13 + $0x90] sm:$0xf]  ;;  %p2539_p5 = scmp.eq.s32.totalorder %s3031_s21, 1 }
  0xb9   : > { %665 = vadd.xlane.f32.xlu0 %v660_v1  ;;  %910 = vmatpush.bf16.msra.mxu2 %v2084_v17  ;;  %v2414_v50 = vld [vmem:[%s3224_s13 + $0x98] sm:$0xf0]  ;;  %v2048_v51 = vor.u32 %v2406_v48, %v2047_v46  ;;  %v2401_v53 = vld [vmem:[%s3224_s13 + $0x34] sm:$0xf]  ;;  %v2029_v54 = vld [vmem:[%s3224_s13 + $0x3c] sm:$0xf0] }
  0xba   : > { %v669_v15 = vsub.f32 1.0, %v668_v4  ;;  %881 = vmatpush.bf16.msra.mxu0 %v2088_v43  ;;  %v2076_v52 = vor.u32 %v2414_v50, %v2075_v49  ;;  %v2035_v55 = vld [vmem:[%s3224_s13 + $0x38] sm:$0xf]  ;;  %v2032_v56 = vor.u32 %v2401_v53, %v2029_v54  ;;  %v2403_v57 = vld [vmem:[%s3224_s13 + $0x40] sm:$0xf0]  ;;  %vm983_vm7 = vcmask 1043456  }
  0xbb   : > { %v2063_v58 = vld [vmem:[%s3224_s13 + $0x78] sm:$0xf]  ;;  %v2411_v59 = vld [vmem:[%s3224_s13 + $0x80] sm:$0xf0]  ;;  %v2036_v60 = vor.u32 %v2403_v57, %v2035_v55  ;;  %v2398_v62 = vld [vmem:[%s3224_s13 + $0x1c] sm:$0xf] }
  0xbc   : > { %v670_v18 = vmul.f32 %v2589_v3, %v669_v15  ;;  %897 = vmatpush.bf16.msra.mxu1 %v2068_v32  ;;  %v2064_v61 = vor.u32 %v2411_v59, %v2063_v58  ;;  %v2017_v63 = vld [vmem:[%s3224_s13 + $0x24] sm:$0xf0]  ;;  %v2400_v2 = vld [vmem:[%s3224_s13 + $0x28] sm:$0xf0]  ;;  %v2395_v7 = vld [vmem:[%s3224_s13 + $0x4] sm:$0xf] }
  0xbd   : > { %911 = vmatpush.bf16.msra.mxu2 %v2072_v34  ;;  %v2408_v4 = vld [vmem:[%s3224_s13 + $0x68] sm:$0xf0]  ;;  %v2005_v8 = vld [vmem:[%s3224_s13 + $0xc] sm:$0xf0]  ;;  %v2011_v9 = vld [vmem:[%s3224_s13 + $0x8] sm:$0xf] }
  0xbe   : > { %v671_v19 = vadd.f32 %v2589_v3, %v670_v18  ;;  %882 = vmatpush.bf16.msra.mxu0 %v2076_v52  ;;  %v2008_v10 = vor.u32 %v2395_v7, %v2005_v8  ;;  %v2397_v11 = vld [vmem:[%s3224_s13 + $0x10] sm:$0xf0]  ;;  %v2039_v12 = vld [vmem:[%s3224_s13 + $0x48] sm:$0xf]  ;;  %v2213_v16 = vld [vmem:[%s3234_s20 + $0xe0] sm:$0xf] }
  0xbf   : > { %v2405_v13 = vld [vmem:[%s3224_s13 + $0x50] sm:$0xf0]  ;;  %v2012_v14 = vor.u32 %v2397_v11, %v2011_v9  ;;  %v2457_v17 = vld [vmem:[%s3234_s20 + $0xec] sm:$0xf0]  ;;  %v2455_v18 = vld [vmem:[%s3234_s20 + $0xe4] sm:$0xf] }
  0xc0   : > { %v3282_v20 = vsel %vm672_vm0, %v2589_v3, %v671_v19  ;;  %898 = vmatpush.bf16.msra.mxu1 %v2056_v38  ;;  %v2051_v3 = vld [vmem:[%s3224_s13 + $0x60] sm:$0xf]  ;;  %v2040_v15 = vor.u32 %v2405_v13, %v2039_v12  ;;  %v2214_v19 = vor.u32 %v2457_v17, %v2213_v16  ;;  %v2453_v29 = vld [vmem:[%s3234_s20 + $0xcc] sm:$0xf0]  ;;  %v2451_v30 = vld [vmem:[%s3234_s20 + $0xc4] sm:$0xf] }
  0xc1   : > { %912 = vmatpush.bf16.msra.mxu2 %v2060_v42  ;;  %v2052_v6 = vor.u32 %v2408_v4, %v2051_v3  ;;  %v2199_v31 = vld [vmem:[%s3234_s20 + $0xd0] sm:$0xf0]  ;;  %v2015_v34 = vld [vmem:[%s3224_s13 + $0x18] sm:$0xf]  ;;  %v2399_v35 = vld [vmem:[%s3224_s13 + $0x20] sm:$0xf0] }
  0xc2   : > { %883 = vmatpush.bf16.msra.mxu0 %v2064_v61  ;;  %v2202_v33 = vor.u32 %v2451_v30, %v2199_v31  ;;  %v2181_v36 = vld [vmem:[%s3234_s20 + $0xa0] sm:$0xf]  ;;  %v2016_v37 = vor.u32 %v2399_v35, %v2015_v34  ;;  %v2449_v38 = vld [vmem:[%s3234_s20 + $0xac] sm:$0xf0]  ;;  %v2447_v39 = vld [vmem:[%s3234_s20 + $0xa4] sm:$0xf] }
  0xc3   : > { %v2183_v40 = vld [vmem:[%s3234_s20 + $0xb0] sm:$0xf0]  ;;  %v2182_v41 = vor.u32 %v2449_v38, %v2181_v36  ;;  %v2003_v43 = vld [vmem:[%s3224_s13] sm:$0xf]  ;;  %v2396_v44 = vld [vmem:[%s3224_s13 + $0x8] sm:$0xf0] }
  0xc4   : > { %899 = vmatpush.bf16.msra.mxu1 %v2044_v47  ;;  %v2186_v42 = vor.u32 %v2447_v39, %v2183_v40  ;;  %v2165_v45 = vld [vmem:[%s3234_s20 + $0x80] sm:$0xf]  ;;  %v2004_v47 = vor.u32 %v2396_v44, %v2003_v43  ;;  %v2445_v48 = vld [vmem:[%s3234_s20 + $0x8c] sm:$0xf0]  ;;  %v2443_v49 = vld [vmem:[%s3234_s20 + $0x84] sm:$0xf] }
  0xc5   : > { %913 = vmatpush.bf16.msra.mxu2 %v2048_v51  ;;  %v2167_v50 = vld [vmem:[%s3234_s20 + $0x90] sm:$0xf0]  ;;  %v2166_v52 = vor.u32 %v2445_v48, %v2165_v45  ;;  %v2149_v55 = vld [vmem:[%s3234_s20 + $0x60] sm:$0xf]  ;;  %v2439_v57 = vld [vmem:[%s3234_s20 + $0x64] sm:$0xf] }
  0xc6   : > { %884 = vmatpush.bf16.msra.mxu0 %v2052_v6  ;;  %v2170_v53 = vor.u32 %v2443_v49, %v2167_v50  ;;  %v2151_v59 = vld [vmem:[%s3234_s20 + $0x70] sm:$0xf0]  ;;  %v2433_v6 = vld [vmem:[%s3234_s20 + $0x2c] sm:$0xf0]  ;;  %v2431_v9 = vld [vmem:[%s3234_s20 + $0x24] sm:$0xf] }
  0xc7   : > { %v2154_v61 = vor.u32 %v2439_v57, %v2151_v59  ;;  %v2135_v3 = vld [vmem:[%s3234_s20 + $0x50] sm:$0xf0]  ;;  %v2427_v16 = vld [vmem:[%s3234_s20 + $0x4] sm:$0xf]  ;;  %v2584_v38 = vld [vmem:[%s3556_s12] ss:$0 sm:$0xff] }
  0xc8   : > { %900 = vmatpush.bf16.msra.mxu1 %v2032_v56  ;;  %v2441_v56 = vld [vmem:[%s3234_s20 + $0x6c] sm:$0xf0]  ;;  %v2103_v17 = vld [vmem:[%s3234_s20 + $0x10] sm:$0xf0]  ;;  %v2586_v44 = vld [vmem:[%s633_s16] ss:$0 sm:$0xff] }
  0xc9   : > { %914 = vmatpush.bf16.msra.mxu2 %v2036_v60  ;;  %v2150_v58 = vor.u32 %v2441_v56, %v2149_v55  ;;  %v2466_v48 = vld [vmem:[%s3268_s15 + $0x38] sm:$0xff]  ;;  %v2465_v49 = vld [vmem:[%s3268_s15 + $0x30] sm:$0xff]  ;;  %v2472_v56 = vld [vmem:[%s3268_s15 + $0x68] sm:$0xff]  ;;  %vm955_vm8 = vcmask 64512   ;;  %s2951_s28 = smov 8  }
  0xca   : > { %885 = vmatpush.bf16.msra.mxu0 %v2040_v15  ;;  %v2429_v15 = vld [vmem:[%s3234_s20 + $0xc] sm:$0xf0]  ;;  %v2474_v50 = vld [vmem:[%s3268_s15 + $0x78] sm:$0xff]  ;;  %v2471_v59 = vld [vmem:[%s3268_s15 + $0x60] sm:$0xff] }
  0xcb   : > { %v2462_v57 = vld [vmem:[%s3268_s15 + $0x18] sm:$0xff] }
 0x124   : > { %v664_v21 = vpop.xlane.xlu0 %663 }
 0x125   : > { %v674_v22 = vmul.f32 %v3282_v20, %v664_v21  ;;  %v2215_v21 = vld [vmem:[%s3234_s20 + $0xf0] sm:$0xf0] }
 0x127   : > { %v3285_v23 = vsub.f32 %v659_v0, %v674_v22  ;;  %v2023_v0 = vld [vmem:[%s3224_s13 + $0x20] sm:$0xf]  ;;  %v2218_v22 = vor.u32 %v2455_v18, %v2215_v21 }
 0x128   : > { %v2024_v5 = vor.u32 %v2400_v2, %v2023_v0  ;;  %v2435_v0 = vld [vmem:[%s3234_s20 + $0x44] sm:$0xf] }
 0x129   : > { %v678_v24 = vmul.f32 %v3285_v23, %v3285_v23  ;;  %v2138_v4 = vor.u32 %v2435_v0, %v2135_v3  ;;  %v2461_v0 = vld [vmem:[%s3268_s15 + $0x10] sm:$0xff]  ;;  %v2470_v3 = vld [vmem:[%s3268_s15 + $0x58] sm:$0xff] }
 0x12a   : > { %915 = vmatpush.bf16.msra.mxu2 %v2024_v5  ;;  %v2117_v5 = vld [vmem:[%s3234_s20 + $0x20] sm:$0xf] }
 0x12b   : > { %680 = vadd.xlane.f32.xlu1 %v678_v24  ;;  %v2027_v24 = vld [vmem:[%s3224_s13 + $0x30] sm:$0xf]  ;;  %v2118_v12 = vor.u32 %v2433_v6, %v2117_v5 }
 0x12c   : > { %v666_v25 = vpop.xlane.xlu0 %665  ;;  %v2460_v5 = vld [vmem:[%s3268_s15 + $0x8] sm:$0xff] }
 0x12d   : > { %v675_v26 = vmul.f32 %v3282_v20, %v666_v25  ;;  %v2402_v25 = vld [vmem:[%s3224_s13 + $0x38] sm:$0xf0]  ;;  %s3555_s13 = scalar_lea.vmem [#allocation3], %s3208_s22 }
 0x12e   : > { %916 = vmatpush.bf16.msra.mxu2 %v2012_v14  ;;  %v2101_v14 = vld [vmem:[%s3234_s20] sm:$0xf] }
 0x12f   : > { %v3290_v27 = vsub.f32 %v660_v1, %v675_v26  ;;  %v2020_v1 = vor.u32 %v2398_v62, %v2017_v63  ;;  %v2197_v26 = vld [vmem:[%s3234_s20 + $0xc0] sm:$0xf]  ;;  %v2437_v63 = vld [vmem:[%s3234_s20 + $0x4c] sm:$0xf0] }
 0x130   : > { %v2198_v32 = vor.u32 %v2453_v29, %v2197_v26  ;;  %v2133_v62 = vld [vmem:[%s3234_s20 + $0x40] sm:$0xf] }
 0x131   : > { %v679_v28 = vmul.f32 %v3290_v27, %v3290_v27  ;;  %901 = vmatpush.bf16.msra.mxu1 %v2020_v1  ;;  %v2134_v2 = vor.u32 %v2437_v63, %v2133_v62 }
 0x132   : > { %1265 = vmatpush.bf16.msrb.mxu2 %v2218_v22  ;;  %v2106_v22 = vor.u32 %v2427_v16, %v2103_v17 }
 0x133   : > { %682 = vadd.xlane.f32.xlu1 %v679_v28  ;;  %v2028_v28 = vor.u32 %v2402_v25, %v2027_v24 }
 0x135   : > { %902 = vmatpush.bf16.msra.mxu1 %v2008_v10  ;;  %886 = vmatpush.bf16.msra.mxu0 %v2028_v28  ;;  %v2119_v10 = vld [vmem:[%s3234_s20 + $0x30] sm:$0xf0] }
 0x136   : > { %1266 = vmatpush.bf16.msrb.mxu2 %v2202_v33  ;;  %v2122_v13 = vor.u32 %v2431_v9, %v2119_v10  ;;  %v2583_v33 = vld [vmem:[%s3555_s13] ss:$0 sm:$0xff] }
 0x139   : > { %1251 = vmatpush.bf16.msrb.mxu1 %v2214_v19  ;;  %887 = vmatpush.bf16.msra.mxu0 %v2016_v37  ;;  %v2102_v19 = vor.u32 %v2429_v15, %v2101_v14 }
 0x13a   : > { %1267 = vmatpush.bf16.msrb.mxu2 %v2186_v42 }
 0x13d   : > { %1252 = vmatpush.bf16.msrb.mxu1 %v2198_v32  ;;  %888 = vmatpush.bf16.msra.mxu0 %v2004_v47 }
 0x13e   : > { %1268 = vmatpush.bf16.msrb.mxu2 %v2170_v53 }
 0x141   : > { %1253 = vmatpush.bf16.msrb.mxu1 %v2182_v41 }
 0x142   : > { %1269 = vmatpush.bf16.msrb.mxu2 %v2154_v61 }
 0x145   : > { %1254 = vmatpush.bf16.msrb.mxu1 %v2166_v52  ;;  %v2473_v52 = vld [vmem:[%s3268_s15 + $0x70] sm:$0xff] }
 0x146   : > { %1270 = vmatpush.bf16.msrb.mxu2 %v2138_v4 }
 0x149   : > { %1255 = vmatpush.bf16.msrb.mxu1 %v2150_v58 }
 0x14a   : > { %1271 = vmatpush.bf16.msrb.mxu2 %v2122_v13  ;;  %v2468_v13 = vld [vmem:[%s3268_s15 + $0x48] sm:$0xff] }
 0x14d   : > { %1256 = vmatpush.bf16.msrb.mxu1 %v2134_v2  ;;  %v3399_v2 = vld [vmem:[%s3236_s5] sm:$0xf]  ;;  %s3557_s5 = sld [smem:[#allocation34_spill]] }
 0x14e   : > { %1272 = vmatpush.bf16.msrb.mxu2 %v2106_v22  ;;  %v1083_v6 = vperm.slane %v3399_v2, 0  ;;  %v1084_v15 = vperm.slane %v3399_v2, 1 }
 0x151   : > { %1257 = vmatpush.bf16.msrb.mxu1 %v2118_v12 }
 0x153   : > { %s1772_s27 = sshll.u32 %s3557_s5, 4  ;;  %s1773_s27 = int_to_ptr.hbm [resolvable:$true] %s1772_s27 }
 0x155   : > { %1258 = vmatpush.bf16.msrb.mxu1 %v2102_v19 }
 0x19e   : > { %v681_v46 = vpop.xlane.xlu1 %680 }
 0x19f   : > { %v684_v51 = vmul.f32 %v681_v46, %v3282_v20 }
 0x1a1   : > { %v686_v54 = vadd.f32 1e-05, %v684_v51  ;;  %v2464_v51 = vld [vmem:[%s3268_s15 + $0x28] sm:$0xff] }
 0x1a3   : > { %2590 = vrsqrt.f32 %v686_v54  ;;  %vm694_vm2 = vweird.f32 %v686_v54 }
 0x1a6   : > { %v683_v60 = vpop.xlane.xlu1 %682 }
 0x1a7   : > { %v685_v1 = vmul.f32 %v683_v60, %v3282_v20 }
 0x1a9   : > { %v2591_v7 = vpop.eup %2590  ;;  %v687_v8 = vadd.f32 1e-05, %v685_v1 }
 0x1aa   : > { %v689_v11 = vmul.f32 %v2591_v7, %v686_v54  ;;  %vm695_vm1 = vweird.f32 %v2591_v7  ;;  %v2463_v54 = vld [vmem:[%s3268_s15 + $0x20] sm:$0xff] }
 0x1ab   : > { %2592 = vrsqrt.f32 %v687_v8  ;;  %vm696_vm3 = vmor %vm694_vm2, %vm695_vm1  ;;  %vm704_vm5 = vweird.f32 %v687_v8 }
 0x1ac   : > { %v690_v20 = vmul.f32 %v2591_v7, %v689_v11  ;;  %v2459_v11 = vld [vmem:[%s3268_s15] sm:$0xff] }
 0x1ae   : > { %v691_v18 = vmul.f32 0.5, %v690_v20 }
 0x1b0   : > { %v692_v21 = vsub.f32 1.5, %v691_v18  ;;  %v2467_v18 = vld [vmem:[%s3268_s15 + $0x40] sm:$0xff] }
 0x1b1   : > { %v2593_v24 = vpop.eup %2592 }
 0x1b2   : > { %v693_v25 = vmul.f32 %v2591_v7, %v692_v21  ;;  %v699_v26 = vmul.f32 %v2593_v24, %v687_v8  ;;  %vm705_vm4 = vweird.f32 %v2593_v24 }
 0x1b3   : > { %vm706_vm6 = vmor %vm704_vm5, %vm705_vm4 }
 0x1b4   : > { %v700_v28 = vmul.f32 %v2593_v24, %v699_v26  ;;  %v697_v29 = vsel %vm696_vm3, %v2591_v7, %v693_v25  ;;  %v2469_v7 = vld [vmem:[%s3268_s15 + $0x50] sm:$0xff] }
 0x1b5   : > { %v708_v32 = vmul.f32 %v697_v29, %v3285_v23  ;;  %v2585_v23 = vld [vmem:[%s630_s26] ss:$0 sm:$0xff]  ;;  %s2950_s26 = smov 128  }
 0x1b6   : > { %v701_v30 = vmul.f32 0.5, %v700_v28 }
 0x1b7   : > { %v713_v37 = vmul.f32 %v2583_v33, %v708_v32  ;;  %v1041_v43 = vmul.f32 %v2585_v23, %v708_v32 }
 0x1b8   : > { %v702_v31 = vsub.f32 1.5, %v701_v30 }
 0x1b9   : > { %v718_v40 = vadd.f32 %v2584_v38, %v713_v37  ;;  %v1046_v46 = vadd.f32 %v2586_v44, %v1041_v43 }
 0x1ba   : > { %v703_v34 = vmul.f32 %v2593_v24, %v702_v31 }
 0x1bc   : > { %v707_v35 = vsel %vm706_vm6, %v2593_v24, %v703_v34 }
 0x1bd   : > { %v709_v36 = vmul.f32 %v707_v35, %v3290_v27 }
 0x1bf   : > { %v714_v39 = vmul.f32 %v2583_v33, %v709_v36  ;;  %v1042_v27 = vmul.f32 %v2585_v23, %v709_v36 }
 0x1c1   : > { %v719_v41 = vadd.f32 %v2584_v38, %v714_v39  ;;  %v1047_v45 = vadd.f32 %v2586_v44, %v1042_v27 }
 0x1c3   : > { %v720_v42 = vpack.c.bf16 %v719_v41, %v718_v40  ;;  %v3384_v47 = vpack.c.bf16 %v1047_v45, %v1046_v46 }
 0x1c5   : > { %889 = vmatmul.bf16.vlgmr.msra.gmra.mxu0 %v720_v42  ;;  %903 = vmatmul.bf16.vlgmr.msra.gmra.mxu1 %v720_v42 }
 0x1c6   : > { %917 = vmatmul.bf16.vlgmr.msra.gmra.mxu2 %v720_v42  ;;  %1643 = vmatpush.bf16.msra.mxu1 %v2466_v48 }
 0x1c7   : > { %1657 = vmatpush.bf16.msra.mxu2 %v2474_v50 }
 0x1ca   : > { %1644 = vmatpush.bf16.msra.mxu1 %v2465_v49 }
 0x1cb   : > { %1658 = vmatpush.bf16.msra.mxu2 %v2473_v52 }
 0x1ce   : > { %1645 = vmatpush.bf16.msra.mxu1 %v2464_v51 }
 0x1cf   : > { %1659 = vmatpush.bf16.msra.mxu2 %v2472_v56 }
 0x1d2   : > { %1646 = vmatpush.bf16.msra.mxu1 %v2463_v54 }
 0x1d3   : > { %1660 = vmatpush.bf16.msra.mxu2 %v2471_v59 }
 0x1d5   : > { %1259 = vmatmul.bf16.vlgmr.msrb.gmra.mxu1 %v3384_v47 }
 0x1d6   : > { %1273 = vmatmul.bf16.vlgmr.msrb.gmra.mxu2 %v3384_v47  ;;  %1647 = vmatpush.bf16.msra.mxu1 %v2462_v57 }
 0x1d7   : > { %1661 = vmatpush.bf16.msra.mxu2 %v2470_v3 }
 0x1da   : > { %1648 = vmatpush.bf16.msra.mxu1 %v2461_v0 }
 0x1db   : > { %1662 = vmatpush.bf16.msra.mxu2 %v2469_v7  ;;  %v2221_v7 = vld [vmem:[%s3234_s20 + $0xe8] sm:$0xf] }
 0x1de   : > { %1649 = vmatpush.bf16.msra.mxu1 %v2460_v5 }
 0x1df   : > { %1663 = vmatpush.bf16.msra.mxu2 %v2468_v13 }
 0x1e2   : > { %1650 = vmatpush.bf16.msra.mxu1 %v2459_v11 }
 0x1e3   : > { %1664 = vmatpush.bf16.msra.mxu2 %v2467_v18 }
 0x242   : > { %v904_v53 = vpop.f32.mrf.mxu1  ;;  %v890_v58 = vpop.f32.mrf.mxu0 }
 0x243   : > { %v925_v55 = vpack.c.bf16 %v904_v53, %v904_v53  ;;  %v923_v61 = vpack.c.bf16 %v890_v58, %v890_v58 }
 0x245   : > { %936 = vmatpush.bf16.xpose.msra.mxu3 %v925_v55 }
 0x249   : > { %v918_v60 = vpop.f32.mrf.mxu2 }
 0x24a   : > { %v927_v62 = vpack.c.bf16 %v918_v60, %v918_v60  ;;  %v906_v63 = vpop.f32.mrf.mxu1  ;;  %v892_v16 = vpop.f32.mrf.mxu0 }
 0x24b   : > { %v926_v1 = vpack.c.bf16 %v906_v63, %v906_v63  ;;  %v924_v22 = vpack.c.bf16 %v892_v16, %v892_v16 }
 0x24c   : > { %937 = vmatmul.bf16.vlgmr.msra.gmra.mxu3 %v923_v61  ;;  %v985_v4 = vsel %vm983_vm7, %v927_v62, 0 }
 0x24d   : > { %949 = vmatpush.bf16.xpose.msrb.mxu3 %v926_v1 }
 0x251   : > { %v920_v8 = vpop.f32.mrf.mxu2 }
 0x252   : > { %v928_v9 = vpack.c.bf16 %v920_v8, %v920_v8  ;;  %v1260_v10 = vpop.f32.mrf.mxu1  ;;  %v2458_v8 = vld [vmem:[%s3234_s20 + $0xf4] sm:$0xf0] }
 0x253   : > { %v1261_v12 = vadd.f32 %v1260_v10, %v1083_v6 }
 0x254   : > { %v1004_v20 = vsel %vm983_vm7, %v928_v9, 0  ;;  %v2222_v9 = vor.u32 %v2458_v8, %v2221_v7  ;;  %v2426_v7 = vld [vmem:[%s3226_s19 + $0x38] sm:$0xff]  ;;  %v2425_v8 = vld [vmem:[%s3226_s19 + $0x30] sm:$0xff] }
 0x255   : > { %994 = vmatpush.bf16.msra.mxu3 %v985_v4  ;;  %v1307_v14 = vmul.f32 %v1261_v12, %v1261_v12  ;;  %1013 = vmatpush.bf16.msrb.mxu0 %v1004_v20 }
 0x256   : > { %1747 = vmatpush.bf16.msrb.mxu1 %v2426_v7 }
 0x257   : > { %v1315_v17 = vmul.f32 %v1307_v14, %v1261_v12 }
 0x259   : > { %v1323_v19 = vmul.f32 0.044715, %v1315_v17  ;;  %v1274_v21 = vpop.f32.mrf.mxu2 }
 0x25a   : > { %v1275_v24 = vadd.f32 %v1274_v21, %v1084_v15  ;;  %v1262_v25 = vpop.f32.mrf.mxu1  ;;  %v2454_v21 = vld [vmem:[%s3234_s20 + $0xd4] sm:$0xf0]  ;;  %1748 = vmatpush.bf16.msrb.mxu1 %v2425_v8 }
 0x25b   : > { %v1331_v26 = vadd.f32 %v1323_v19, %v1261_v12  ;;  %v1263_v28 = vadd.f32 %v1262_v25, %v1083_v6  ;;  %v2205_v19 = vld [vmem:[%s3234_s20 + $0xc8] sm:$0xf]  ;;  %v2450_v25 = vld [vmem:[%s3234_s20 + $0xb4] sm:$0xf0] }
 0x25c   : > { %v1308_v29 = vmul.f32 %v1275_v24, %v1275_v24  ;;  %950 = vmatmul.bf16.vlgmr.msrb.gmra.mxu3 %v924_v22  ;;  %v2206_v22 = vor.u32 %v2454_v21, %v2205_v19  ;;  %v2481_v19 = vld [vmem:[%s3268_s15 + $0xb0] sm:$0xff]  ;;  %v2480_v21 = vld [vmem:[%s3268_s15 + $0xa8] sm:$0xff] }
 0x25d   : > { %v1339_v30 = vmul.f32 0.7978846, %v1331_v26  ;;  %v1311_v31 = vmul.f32 %v1263_v28, %v1263_v28  ;;  %1279 = vmatpush.bf16.msrb.mxu3 %v2222_v9 }
 0x25e   : > { %v1316_v32 = vmul.f32 %v1308_v29, %v1275_v24  ;;  %v2446_v29 = vld [vmem:[%s3234_s20 + $0x94] sm:$0xf0] }
 0x25f   : > { %v1319_v33 = vmul.f32 %v1311_v31, %v1263_v28  ;;  %2594 = vtanh.f32 %v1339_v30  ;;  %v2157_v31 = vld [vmem:[%s3234_s20 + $0x68] sm:$0xf] }
 0x260   : > { %v1324_v34 = vmul.f32 0.044715, %v1316_v32  ;;  %v2442_v32 = vld [vmem:[%s3234_s20 + $0x74] sm:$0xf0] }
 0x261   : > { %v1327_v35 = vmul.f32 0.044715, %v1319_v33  ;;  %v1276_v36 = vpop.f32.mrf.mxu2  ;;  %1280 = vmatpush.bf16.msrb.mxu3 %v2206_v22  ;;  %v2456_v33 = vld [vmem:[%s3234_s20 + $0xec] sm:$0xf]  ;;  %v2490_v22 = vld [vmem:[%s3268_s15 + $0xf8] sm:$0xff] }
 0x262   : > { %v1332_v37 = vadd.f32 %v1324_v34, %v1275_v24  ;;  %v1277_v38 = vadd.f32 %v1276_v36, %v1084_v15  ;;  %v2158_v34 = vor.u32 %v2442_v32, %v2157_v31  ;;  %v2487_v32 = vld [vmem:[%s3268_s15 + $0xe0] sm:$0xff] }
 0x263   : > { %v1335_v39 = vadd.f32 %v1327_v35, %v1263_v28  ;;  %v2223_v35 = vld [vmem:[%s3234_s20 + $0xf8] sm:$0xf0] }
 0x264   : > { %v1340_v40 = vmul.f32 0.7978846, %v1332_v37  ;;  %v1312_v41 = vmul.f32 %v1277_v38, %v1277_v38  ;;  %v2226_v36 = vor.u32 %v2456_v33, %v2223_v35  ;;  %v2141_v37 = vld [vmem:[%s3234_s20 + $0x48] sm:$0xf]  ;;  %v1085_v35 = vperm.slane %v3399_v2, 2 }
 0x265   : > { %v1343_v42 = vmul.f32 0.7978846, %v1335_v39  ;;  %v2595_v27 = vpop.eup %2594  ;;  %v2452_v39 = vld [vmem:[%s3234_s20 + $0xcc] sm:$0xf] }
 0x266   : > { %v1320_v23 = vmul.f32 %v1312_v41, %v1277_v38  ;;  %v1355_v44 = vadd.f32 1.0, %v2595_v27  ;;  %1293 = vmatpush.bf16.msra.mxu0 %v2226_v36  ;;  %v2207_v41 = vld [vmem:[%s3234_s20 + $0xd8] sm:$0xf0]  ;;  %v2434_v27 = vld [vmem:[%s3234_s20 + $0x34] sm:$0xf0]  ;;  %v2486_v36 = vld [vmem:[%s3268_s15 + $0xd8] sm:$0xff] }
 0x267   : > { %2596 = vtanh.f32 %v1343_v42  ;;  %v2210_v42 = vor.u32 %v2452_v39, %v2207_v41  ;;  %v2485_v41 = vld [vmem:[%s3268_s15 + $0xd0] sm:$0xff] }
 0x268   : > { %2598 = vtanh.f32 %v1340_v40  ;;  %v1328_v43 = vmul.f32 0.044715, %v1320_v23  ;;  %v1363_v50 = vmul.f32 0.5, %v1355_v44  ;;  %v2125_v23 = vld [vmem:[%s3234_s20 + $0x28] sm:$0xf] }
 0x269   : > { %v2126_v44 = vor.u32 %v2434_v27, %v2125_v23  ;;  %v2484_v27 = vld [vmem:[%s3268_s15 + $0xc8] sm:$0xff] }
 0x26a   : > { %v1336_v45 = vadd.f32 %v1328_v43, %v1277_v38  ;;  %v1371_v54 = vmul.f32 %v1363_v50, %v1261_v12  ;;  %1294 = vmatpush.bf16.msra.mxu0 %v2210_v42  ;;  %v2448_v43 = vld [vmem:[%s3234_s20 + $0xac] sm:$0xf] }
 0x26b   : > { %v2444_v50 = vld [vmem:[%s3234_s20 + $0x8c] sm:$0xf] }
 0x26c   : > { %v1344_v46 = vmul.f32 0.7978846, %v1336_v45  ;;  %v2191_v45 = vld [vmem:[%s3234_s20 + $0xb8] sm:$0xf0] }
 0x26d   : > { %v2597_v48 = vpop.eup %2596 }
 0x26e   : > { %v2599_v49 = vpop.eup %2598  ;;  %v1359_v51 = vadd.f32 1.0, %v2597_v48  ;;  %2600 = vtanh.f32 %v1344_v46  ;;  %v2194_v46 = vor.u32 %v2448_v43, %v2191_v45  ;;  %v2109_v48 = vld [vmem:[%s3234_s20 + $0x8] sm:$0xf] }
 0x26f   : > { %v1356_v53 = vadd.f32 1.0, %v2599_v49  ;;  %v2430_v49 = vld [vmem:[%s3234_s20 + $0x14] sm:$0xf0] }
 0x270   : > { %v1367_v52 = vmul.f32 0.5, %v1359_v51  ;;  %1295 = vmatpush.bf16.msra.mxu0 %v2194_v46  ;;  %v2110_v51 = vor.u32 %v2430_v49, %v2109_v48 }
 0x271   : > { %v1364_v58 = vmul.f32 0.5, %v1356_v53 }
 0x272   : > { %v1375_v55 = vmul.f32 %v1367_v52, %v1263_v28  ;;  %v2173_v28 = vld [vmem:[%s3234_s20 + $0x88] sm:$0xf]  ;;  %v2175_v52 = vld [vmem:[%s3234_s20 + $0x98] sm:$0xf0] }
 0x273   : > { %v1372_v61 = vmul.f32 %v1364_v58, %v1275_v24  ;;  %v2189_v24 = vld [vmem:[%s3234_s20 + $0xa8] sm:$0xf]  ;;  %v2174_v30 = vor.u32 %v2446_v29, %v2173_v28  ;;  %v2178_v53 = vor.u32 %v2444_v50, %v2175_v52  ;;  %v2143_v58 = vld [vmem:[%s3234_s20 + $0x58] sm:$0xf0]  ;;  %v2488_v28 = vld [vmem:[%s3268_s15 + $0xe8] sm:$0xff] }
 0x274   : > { %v2601_v56 = vpop.eup %2600  ;;  %v1379_v57 = vpack.c.bf16 %v1375_v55, %v1371_v54  ;;  %v2190_v26 = vor.u32 %v2450_v25, %v2189_v24  ;;  %v2440_v54 = vld [vmem:[%s3234_s20 + $0x6c] sm:$0xf]  ;;  %v2159_v55 = vld [vmem:[%s3234_s20 + $0x78] sm:$0xf0] }
 0x275   : > { %v1360_v59 = vadd.f32 1.0, %v2601_v56  ;;  %1296 = vmatpush.bf16.msra.mxu0 %v2178_v53  ;;  %v2162_v56 = vor.u32 %v2440_v54, %v2159_v55  ;;  %v2479_v24 = vld [vmem:[%s3268_s15 + $0xa0] sm:$0xff]  ;;  %v2489_v25 = vld [vmem:[%s3268_s15 + $0xf0] sm:$0xff] }
 0x276   : > { %1651 = vmatmul.bf16.vlgmr.msra.gmra.mxu1 %v1379_v57  ;;  %1281 = vmatpush.bf16.msrb.mxu3 %v2190_v26  ;;  %v2436_v57 = vld [vmem:[%s3234_s20 + $0x4c] sm:$0xf]  ;;  %v2478_v26 = vld [vmem:[%s3268_s15 + $0x98] sm:$0xff] }
 0x277   : > { %v1368_v60 = vmul.f32 0.5, %v1360_v59  ;;  %v2146_v59 = vor.u32 %v2436_v57, %v2143_v58  ;;  %v2483_v50 = vld [vmem:[%s3268_s15 + $0xc0] sm:$0xff] }
 0x279   : > { %v1376_v62 = vmul.f32 %v1368_v60, %v1277_v38  ;;  %v2438_v38 = vld [vmem:[%s3234_s20 + $0x54] sm:$0xf0]  ;;  %1297 = vmatpush.bf16.msra.mxu0 %v2162_v56 }
 0x27a   : > { %1282 = vmatpush.bf16.msrb.mxu3 %v2174_v30  ;;  %v2142_v40 = vor.u32 %v2438_v38, %v2141_v37  ;;  %v2477_v30 = vld [vmem:[%s3268_s15 + $0x90] sm:$0xff]  ;;  %v2475_v38 = vld [vmem:[%s3268_s15 + $0x80] sm:$0xff] }
 0x27b   : > { %v1380_v63 = vpack.c.bf16 %v1376_v62, %v1372_v61  ;;  %v2432_v61 = vld [vmem:[%s3234_s20 + $0x2c] sm:$0xf]  ;;  %v2127_v62 = vld [vmem:[%s3234_s20 + $0x38] sm:$0xf0] }
 0x27d   : > { %1665 = vmatmul.bf16.vlgmr.msra.gmra.mxu2 %v1380_v63  ;;  %1298 = vmatpush.bf16.msra.mxu0 %v2146_v59  ;;  %v2130_v63 = vor.u32 %v2432_v61, %v2127_v62 }
 0x27e   : > { %1283 = vmatpush.bf16.msrb.mxu3 %v2158_v34  ;;  %v2476_v34 = vld [vmem:[%s3268_s15 + $0x88] sm:$0xff] }
 0x281   : > { %1299 = vmatpush.bf16.msra.mxu0 %v2130_v63 }
 0x282   : > { %1284 = vmatpush.bf16.msrb.mxu3 %v2142_v40 }
 0x286   : > { %1285 = vmatpush.bf16.msrb.mxu3 %v2126_v44  ;;  %v1086_v44 = vperm.slane %v3399_v2, 3 }
 0x28a   : > { %1286 = vmatpush.bf16.msrb.mxu3 %v2110_v51 }
 0x2cf   : > { %v938_v0 = vpop.f32.mrf.mxu3 }
 0x2d0   : > { %v956_v1 = vsel %vm955_vm8, %v938_v0, -inf }
 0x2d1   : > { %957 = vmax.xlane.f32.xlu2 %v956_v1  ;;  %v2111_v1 = vld [vmem:[%s3234_s20 + $0x18] sm:$0xf0] }
 0x2d7   : > { %v940_v3 = vpop.f32.mrf.mxu3 }
 0x2df   : > { %v951_v4 = vpop.f32.mrf.mxu3 }
 0x2e0   : > { %v959_v5 = vsel %vm955_vm8, %v951_v4, -inf }
 0x2e1   : > { %960 = vmax.xlane.f32.xlu2 %v959_v5 }
 0x2e7   : > { %v953_v6 = vpop.f32.mrf.mxu3 }
 0x344   : > { %v958_v10 = vpop.xlane.xlu2 %957 }
 0x345   : > { %v962_v11 = vsub.f32 %v938_v0, %v958_v10  ;;  %v2428_v0 = vld [vmem:[%s3234_s20 + $0xc] sm:$0xf] }
 0x346   : > { %v2424_v10 = vld [vmem:[%s3226_s19 + $0x28] sm:$0xff] }
 0x347   : > { %v964_v12 = vmul.f32 1.442695, %v962_v11  ;;  %1749 = vmatpush.bf16.msrb.mxu1 %v2424_v10  ;;  %v2423_v11 = vld [vmem:[%s3226_s19 + $0x20] sm:$0xff] }
 0x349   : > { %2602 = vpow2.f32 %v964_v12 }
 0x34b   : > { %1750 = vmatpush.bf16.msrb.mxu1 %v2423_v11 }
 0x34f   : > { %v3415_v20 = vpop.eup %2602 }
 0x350   : > { %v968_v13 = vsel %vm955_vm8, %v3415_v20, 0.0 }
 0x351   : > { %969 = vadd.xlane.f32.xlu0 %v968_v13 }
 0x354   : > { %v961_v14 = vpop.xlane.xlu2 %960 }
 0x355   : > { %v963_v15 = vsub.f32 %v951_v4, %v961_v14  ;;  %v2114_v4 = vor.u32 %v2428_v0, %v2111_v1  ;;  %v2422_v14 = vld [vmem:[%s3226_s19 + $0x18] sm:$0xff] }
 0x356   : > { %1751 = vmatpush.bf16.msrb.mxu1 %v2422_v14 }
 0x357   : > { %v966_v16 = vmul.f32 1.442695, %v963_v15  ;;  %1300 = vmatpush.bf16.msra.mxu0 %v2114_v4  ;;  %v2421_v15 = vld [vmem:[%s3226_s19 + $0x10] sm:$0xff] }
 0x359   : > { %2604 = vpow2.f32 %v966_v16  ;;  %v2420_v16 = vld [vmem:[%s3226_s19 + $0x8] sm:$0xff] }
 0x35a   : > { %1752 = vmatpush.bf16.msrb.mxu1 %v2421_v15 }
 0x35e   : > { %1753 = vmatpush.bf16.msrb.mxu1 %v2420_v16 }
 0x35f   : > { %v3419_v17 = vpop.eup %2604 }
 0x360   : > { %v971_v18 = vsel %vm955_vm8, %v3419_v17, 0.0 }
 0x361   : > { %972 = vadd.xlane.f32.xlu1 %v971_v18  ;;  %v2482_v18 = vld [vmem:[%s3268_s15 + $0xb8] sm:$0xff] }
 0x3c4   : > { %v970_v60 = vpop.xlane.xlu0 %969 }
 0x3c5   : > { %2606 = vrcp.f32 %v970_v60 }
 0x3cb   : > { %v2607_v3 = vpop.eup %2606 }
 0x3cc   : > { %v976_v5 = vmul.f32 %v2607_v3, %v3415_v20 }
 0x3ce   : > { %v978_v6 = vpack.c.bf16 %v976_v5, %v976_v5 }
 0x3d0   : > { %2097 = vmatmul.msk.bf16.vlgmr.msra.gmra.mxu3 %vm955_vm8, %v978_v6 }
 0x3d1   : > { %1671 = vmatpush.bf16.msra.mxu3 %v2482_v18 }
 0x3d4   : > { %v973_v9 = vpop.xlane.xlu1 %972 }
 0x3d5   : > { %2608 = vrcp.f32 %v973_v9  ;;  %1672 = vmatpush.bf16.msra.mxu3 %v2481_v19 }
 0x3d9   : > { %1673 = vmatpush.bf16.msra.mxu3 %v2480_v21 }
 0x3db   : > { %v2609_v12 = vpop.eup %2608 }
 0x3dc   : > { %v977_v20 = vmul.f32 %v2609_v12, %v3419_v17  ;;  %v2419_v17 = vld [vmem:[%s3226_s19] sm:$0xff] }
 0x3dd   : > { %1754 = vmatpush.bf16.msrb.mxu1 %v2419_v17  ;;  %1674 = vmatpush.bf16.msra.mxu3 %v2479_v24  ;;  %v1652_v24 = vpop.f32.mrf.mxu1 }
 0x3de   : > { %v979_v13 = vpack.c.bf16 %v977_v20, %v977_v20 }
 0x3e0   : > { %2098 = vmatmul.msk.bf16.vlgmr.msrb.gmra.mxu0 %vm955_vm8, %v979_v13  ;;  %1287 = vmatmul.bf16.vlgmr.msrb.gmra.mxu3 %v3384_v47 }
 0x3e1   : > { %1685 = vmatpush.bf16.msrb.mxu0 %v2490_v22  ;;  %1675 = vmatpush.bf16.msra.mxu3 %v2478_v26 }
 0x3e5   : > { %1686 = vmatpush.bf16.msrb.mxu0 %v2489_v25  ;;  %1676 = vmatpush.bf16.msra.mxu3 %v2477_v30  ;;  %v2587_v25 = vld [vmem:[%s636_s23] ss:$0 sm:$0xff]  ;;  %v1654_v26 = vpop.f32.mrf.mxu1 }
 0x3e9   : > { %1687 = vmatpush.bf16.msrb.mxu0 %v2488_v28  ;;  %1677 = vmatpush.bf16.msra.mxu3 %v2476_v34  ;;  %v1666_v28 = vpop.f32.mrf.mxu2 }
 0x3ed   : > { %1688 = vmatpush.bf16.msrb.mxu0 %v2487_v32  ;;  %1678 = vmatpush.bf16.msra.mxu3 %v2475_v38 }
 0x3f0   : > { %1301 = vmatmul.bf16.vlgmr.msra.gmra.mxu0 %v3384_v47 }
 0x3f1   : > { %1689 = vmatpush.bf16.msrb.mxu0 %v2486_v36  ;;  %v1668_v36 = vpop.f32.mrf.mxu2 }
 0x3f5   : > { %1690 = vmatpush.bf16.msrb.mxu0 %v2485_v41  ;;  %v2618_v41 = vld [vmem:[#allocation15] sm:$0xff] }
 0x3f9   : > { %1691 = vmatpush.bf16.msrb.mxu0 %v2484_v27 }
 0x3fd   : > { %1692 = vmatpush.bf16.msrb.mxu0 %v2483_v50 }
 0x453   : > { %v996_v47 = vpop.f32.mrf.mxu3 }
 0x45b   : > { %v998_v29 = vpop.f32.mrf.mxu3 }
 0x45c   : > { %v1653_v29 = vadd.f32 %v2587_v25, %v1652_v24 }
 0x45d   : > { %v1015_v31 = vpop.f32.mrf.mxu0 }
 0x45e   : > { %v1019_v33 = vpack.c.bf16 %v1015_v31, %v996_v47  ;;  %v1667_v31 = vadd.f32 %v1666_v28, %v1653_v29 }
 0x460   : > { %1755 = vmatmul.bf16.vlgmr.msrb.gmra.mxu1 %v1019_v33 }
 0x463   : > { %v1288_v37 = vpop.f32.mrf.mxu3 }
 0x464   : > { %v1289_v39 = vadd.f32 %v1288_v37, %v1085_v35  ;;  %v1655_v37 = vadd.f32 %v2587_v25, %v1654_v26 }
 0x465   : > { %v1017_v40 = vpop.f32.mrf.mxu0 }
 0x466   : > { %v1309_v42 = vmul.f32 %v1289_v39, %v1289_v39  ;;  %v1669_v40 = vadd.f32 %v1668_v36, %v1655_v37 }
 0x468   : > { %v1317_v23 = vmul.f32 %v1309_v42, %v1289_v39 }
 0x46a   : > { %v1325_v43 = vmul.f32 0.044715, %v1317_v23 }
 0x46b   : > { %v1290_v45 = vpop.f32.mrf.mxu3 }
 0x46c   : > { %v1333_v46 = vadd.f32 %v1325_v43, %v1289_v39  ;;  %v1291_v48 = vadd.f32 %v1290_v45, %v1085_v35 }
 0x46d   : > { %v1302_v49 = vpop.f32.mrf.mxu0 }
 0x46e   : > { %v1341_v51 = vmul.f32 0.7978846, %v1333_v46  ;;  %v1313_v52 = vmul.f32 %v1291_v48, %v1291_v48  ;;  %v1303_v53 = vadd.f32 %v1302_v49, %v1086_v44  ;;  %v2619_v46 = vld [vmem:[#allocation15 + $0x8] sm:$0xff] }
 0x470   : > { %v1321_v54 = vmul.f32 %v1313_v52, %v1291_v48  ;;  %v1310_v55 = vmul.f32 %v1303_v53, %v1303_v53  ;;  %2610 = vtanh.f32 %v1341_v51 }
 0x472   : > { %v1329_v56 = vmul.f32 0.044715, %v1321_v54  ;;  %v1318_v57 = vmul.f32 %v1310_v55, %v1303_v53 }
 0x474   : > { %v1337_v58 = vadd.f32 %v1329_v56, %v1291_v48  ;;  %v1326_v59 = vmul.f32 0.044715, %v1318_v57 }
 0x475   : > { %v1304_v60 = vpop.f32.mrf.mxu0 }
 0x476   : > { %v1345_v61 = vmul.f32 0.7978846, %v1337_v58  ;;  %v1334_v2 = vadd.f32 %v1326_v59, %v1303_v53  ;;  %v1305_v62 = vadd.f32 %v1304_v60, %v1086_v44  ;;  %v2611_v63 = vpop.eup %2610 }
 0x477   : > { %v1357_v4 = vadd.f32 1.0, %v2611_v63 }
 0x478   : > { %2612 = vtanh.f32 %v1345_v61  ;;  %v1342_v0 = vmul.f32 0.7978846, %v1334_v2  ;;  %v1314_v1 = vmul.f32 %v1305_v62, %v1305_v62 }
 0x479   : > { %v1365_v8 = vmul.f32 0.5, %v1357_v4 }
 0x47a   : > { %v1322_v3 = vmul.f32 %v1314_v1, %v1305_v62  ;;  %2614 = vtanh.f32 %v1342_v0 }
 0x47b   : > { %v1373_v20 = vmul.f32 %v1365_v8, %v1289_v39 }
 0x47c   : > { %v1330_v5 = vmul.f32 0.044715, %v1322_v3 }
 0x47e   : > { %v2613_v6 = vpop.eup %2612  ;;  %v1338_v7 = vadd.f32 %v1330_v5, %v1305_v62 }
 0x47f   : > { %v1361_v9 = vadd.f32 1.0, %v2613_v6 }
 0x480   : > { %v1346_v10 = vmul.f32 0.7978846, %v1338_v7  ;;  %v2615_v12 = vpop.eup %2614 }
 0x481   : > { %v1369_v11 = vmul.f32 0.5, %v1361_v9  ;;  %v1358_v14 = vadd.f32 1.0, %v2615_v12 }
 0x482   : > { %2616 = vtanh.f32 %v1346_v10 }
 0x483   : > { %v1377_v13 = vmul.f32 %v1369_v11, %v1291_v48  ;;  %v1366_v17 = vmul.f32 0.5, %v1358_v14 }
 0x485   : > { %v1381_v15 = vpack.c.bf16 %v1377_v13, %v1373_v20  ;;  %v1374_v21 = vmul.f32 %v1366_v17, %v1303_v53 }
 0x487   : > { %1679 = vmatmul.bf16.vlgmr.msra.gmra.mxu3 %v1381_v15 }
 0x488   : > { %v2617_v16 = vpop.eup %2616 }
 0x489   : > { %v1362_v18 = vadd.f32 1.0, %v2617_v16 }
 0x48b   : > { %v1370_v19 = vmul.f32 0.5, %v1362_v18 }
 0x48d   : > { %v1378_v22 = vmul.f32 %v1370_v19, %v1305_v62 }
 0x48f   : > { %v1382_v47 = vpack.c.bf16 %v1378_v22, %v1374_v21 }
 0x491   : > { %1693 = vmatmul.bf16.vlgmr.msrb.gmra.mxu0 %v1382_v47 }
 0x4dd   : > { %v1756_v33 = vpop.f32.mrf.mxu1 }
 0x4e5   : > { %v1758_v44 = vpop.f32.mrf.mxu1 }
 0x50a   : > { %v1680_v30 = vpop.f32.mrf.mxu3 }
 0x50b   : > { %v1681_v32 = vadd.f32 %v1680_v30, %v1667_v31 }
 0x50e   : > { %v1694_v34 = vpop.f32.mrf.mxu0 }
 0x50f   : > { %v1695_v35 = vadd.f32 %v1694_v34, %v1681_v32 }
 0x511   : > { %v1757_v38 = vadd.f32 %v1756_v33, %v1695_v35 }
 0x512   : > { %v1682_v39 = vpop.f32.mrf.mxu3 }
 0x513   : > { %v1761_v42 = vadd.f32 %v2618_v41, %v1757_v38  ;;  %v1683_v23 = vadd.f32 %v1682_v39, %v1669_v40 }
 0x515   : > { %1763 = vst [vmem:[#allocation15] sm:$0xff] %v1761_v42 }
 0x516   : > { %v1696_v27 = vpop.f32.mrf.mxu0 }
 0x517   : > { %v1697_v43 = vadd.f32 %v1696_v27, %v1683_v23 }
 0x519   : > { %v1759_v45 = vadd.f32 %v1758_v44, %v1697_v43 }
 0x51b   : > { %v1762_v48 = vadd.f32 %v2619_v46, %v1759_v45 }
 0x51d   : > { %1764 = vst [vmem:[#allocation15 + $0x8] sm:$0xff] %v1762_v48 }
 0x51e   : > { %2512 = dma.vmem_to_hbm [thread:$0]  (%p2539_p5), %s652_s6, 256, %s1773_s27, [#allocation5], %s2950_s26, %s2950_s26, %s2951_s28  }
 0x51f   : > { %2923 = dma.done.wait (%p2539_p5), [#allocation5], 256  }
 0x520   : > { %2925 = vsyncadd (%p2539_p5), [#allocation5], 4294967040 }
 0x521 PF: > { %s3558_s20 = sld [smem:[#allocation27_spill]]  ;;  %s3561_s17 = smov %s2932_s18 }
 0x522   : > { %s3559_s29 = sld [smem:[#allocation26_spill]] }
 0x523   : > { %s3560_s19 = sld [smem:[#allocation28_spill]] }
 0x527   : > { %p31_p7 = scmp.ge.s32.totalorder %s3558_s20, 4  }
 0x528   : > { %s3562_s18 = smov %s3559_s29 }
 0x529   :  { %33 = sbr.rel (!%p31_p7) target bundleno = 17 (0x11), region = 186 }
 0x52e   :  { %1789 = vsyncpa [#allocation4], 1 }
 0x52f   :  { %1791 = vsyncpa [#allocation4 + $0x1], 1 }
 0x530   :  { %1792 = vsyncpa [#allocation7], 1 }
 0x531   :  { %1794 = vsyncpa [#allocation7 + $0x1], 1 }
 0x532   :  { %1795 = vsyncpa [#allocation10], 1 }
 0x533   :  { %1797 = vsyncpa [#allocation10 + $0x1], 1 }
 0x534   :  { %1798 = vsyncpa [#allocation13], 1 }
 0x535   :  { %1800 = vsyncpa [#allocation13 + $0x1], 1 }
 0x536   :  { %1801 = vsyncpa [#allocation5], 1 }
 0x537   :  { %1803 = vsyncpa [#allocation5 + $0x1], 1 }
 0x538   :  { %1804 = vsyncmov [#allocation2] }
 0x53b   :  { %s1805_s21 = vpop.sfrf %1804 }
 0x53c   :  { %p2391_p10 = scmp.ne.s32.totalorder %s1805_s21, 0 }
 0x53e   :  { %1809 = shalt.err (%p2391_p10)  }

</bundles_post_ra>
